<compile_context>
chip_gen: v7x
topology: tpu7x:2x2x1
jax: 0.10.0
libtpu: 0.0.40
codegen_flags: <defaults>
</compile_context>

<pallas_src>
import functools

import jax
import jax.numpy as jnp
import numpy as np
from jax.experimental import pallas as pl
from jax.experimental.pallas import tpu as pltpu

LATENT_DIM = 32
LATENT_PAD = 128     # lane-dense padded latent width (multiple of 128)
DEFAULT_TB = 256     # target batch tile (v6e/v7x MXU depth; fine on v5e too)


def _round_up(v, m):
    return ((v + m - 1) // m) * m


def _choose_batch_tile(batch, default_tb=DEFAULT_TB):
    """Remainder-aware batch tile; >=2 balanced tiles once B > 128 (v7x 2 TCs)."""
    if batch <= 128:
        return batch                                    # single full-array tile
    n_tiles = max(pl.cdiv(batch, default_tb), 2)
    tb = _round_up(pl.cdiv(batch, n_tiles), 8)
    return min(tb, batch)


def _fcae_kernel(
    x_ref, b_ref,
    # encoder weights (ew5 column-padded to LATENT_PAD)
    ew0, ew1, ew2, ew3, ew4, ew5,
    # decoder weights (dw0 is the fused [W_z ; W_ic ; 0] first-layer weight)
    dw0, dw1, dw2, dw3, dw4, dw5,
    # outputs
    out_ref, z_ref,
    # scratch
    dec_in_ref,
    *, widths, x_dim, dec_in_pad,
):
    bf16 = jnp.bfloat16

    def layer(h_f32, w_ref, row, relu=True):
        w = widths[row]
        # bf16 MXU matmul, f32 accumulation; bias + ReLU in f32.
        y = jnp.dot(h_f32.astype(bf16), w_ref[...],
                    preferred_element_type=jnp.float32)
        y = y + b_ref[row:row + 1, :w]
        return jnp.maximum(y, 0.0) if relu else y

    h = x_ref[...]                                   # (TB, T*X) f32
    x0 = x_ref[:, :x_dim]                            # initial condition x[:,0,:]

    # ---- encoder ----
    h = layer(h, ew0, 0)                             # (TB, 256)
    h = layer(h, ew1, 1)                             # (TB, 256)
    h = layer(h, ew2, 2)                             # (TB, 256)
    h = layer(h, ew3, 3)                             # (TB, 128)
    h = layer(h, ew4, 4)                             # (TB, 128)
    z = layer(h, ew5, 5, relu=False)                 # (TB, 128); cols >=32 == 0
    z_ref[...] = z                                   # lane-dense unmasked store

    # ---- decoder ----
    # Stage [z | x0 | 0] in VMEM and run the first decoder layer as ONE fused
    # matmul against [W_z ; W_ic ; 0] (weight rows beyond 32 + x_dim are zero).
    if dec_in_pad > LATENT_PAD:
        dec_in_ref[...] = jnp.zeros(dec_in_ref.shape, dec_in_ref.dtype)
    dec_in_ref[:, :LATENT_PAD] = z
    dec_in_ref[:, LATENT_DIM:LATENT_DIM + x_dim] = x0

    h = layer(dec_in_ref[...], dw0, 6)               # (TB, 128)
    h = layer(h, dw1, 7)                             # (TB, 128)
    h = layer(h, dw2, 8)                             # (TB, 256)
    h = layer(h, dw3, 9)                             # (TB, 256)
    h = layer(h, dw4, 10)                            # (TB, 256)
    out_ref[...] = layer(h, dw5, 11, relu=False)     # (TB, T*X)


def init_params(key, input_dim):
    """Deterministic params. Linear(i, o): W (i, o), b (o,)."""
    T, X = input_dim
    flat = T * X
    ic_dim = X
    enc_sizes = [(flat, 256), (256, 256), (256, 256), (256, 128), (128, 128),
                 (128, LATENT_DIM)]
    dec_sizes = [(LATENT_DIM + ic_dim, 128), (128, 128), (128, 256), (256, 256),
                 (256, 256), (256, flat)]
    params = []
    for (i, o) in enc_sizes + dec_sizes:
        key, kw, kb = jax.random.split(key, 3)
        bound = 1.0 / np.sqrt(i)
        W = jax.random.uniform(kw, (i, o), jnp.float32, -bound, bound)
        b = jax.random.uniform(kb, (o,), jnp.float32, -bound, bound)
        params.append((W, b))
    return params[:6], params[6:]


def pack_params(enc, dec, input_dim):
    """One-time packing (hoisted out of the per-call wrapper): bf16 weights with
    latent dims zero-padded, fused first decoder weight, one f32 bias slab."""
    T, X = input_dim
    flat = T * X
    bf = jnp.bfloat16

    eW = [W.astype(bf) for (W, _) in enc]
    # pad last encoder weight 32 -> 128 output columns with zeros (lane-dense z)
    eW[5] = (jnp.zeros((enc[5][0].shape[0], LATENT_PAD), bf)
             .at[:, :LATENT_DIM].set(eW[5]))

    # fused first decoder weight: rows [0,32) = W_z, rows [32, 32+X) = W_ic,
    # remaining rows zero; it consumes the VMEM-staged [z | x0 | 0] slab.
    dec_in_pad = max(LATENT_PAD, _round_up(LATENT_DIM + X, 128))
    dW0 = dec[0][0]                                   # (LATENT_DIM + X, 128)
    dw0 = (jnp.zeros((dec_in_pad, dW0.shape[1]), bf)
           .at[:dW0.shape[0], :].set(dW0.astype(bf)))
    dW = [dw0] + [W.astype(bf) for (W, _) in dec[1:]]

    # per-layer output widths used inside the kernel (latent padded to 128)
    widths = (256, 256, 256, 128, 128, LATENT_PAD,
              128, 128, 256, 256, 256, flat)
    maxw = max(widths)
    biases = [b for (_, b) in enc] + [b for (_, b) in dec]
    b_packed = jnp.zeros((12, maxw), jnp.float32)
    for i, b in enumerate(biases):
        b_packed = b_packed.at[i, :b.shape[0]].set(b)

    return dict(weights=tuple(eW + dW), biases=b_packed, widths=widths,
                flat=flat, x_dim=X, dec_in_pad=dec_in_pad)


def fcae_forward(x, packed):
    """x: (B, T, X) f32 -> (out (B, T, X) f32, z (B, LATENT_DIM) f32)."""
    B = x.shape[0]
    flat, X = packed["flat"], packed["x_dim"]
    dec_in_pad = packed["dec_in_pad"]
    weights = packed["weights"]
    b_packed = packed["biases"]

    x_flat = x.reshape(B, flat)

    TB = _choose_batch_tile(B)
    grid = (pl.cdiv(B, TB),)

    tile_map = lambda b: (b, 0)                      # streamed batch tiles
    const_map = lambda b: (0, 0)                     # weights: resident, 1 DMA

    in_specs = (
        [pl.BlockSpec((TB, flat), tile_map),         # x (x0 derived in-kernel)
         pl.BlockSpec(b_packed.shape, const_map)]    # packed biases
        + [pl.BlockSpec(w.shape, const_map) for w in weights]
    )
    out_specs = (
        pl.BlockSpec((TB, flat), tile_map),
        pl.BlockSpec((TB, LATENT_PAD), tile_map),
    )

    # VMEM budget: double-buffered streamed blocks + resident weights + slack.
    weight_bytes = sum(int(np.prod(w.shape)) * w.dtype.itemsize for w in weights)
    stream_bytes = 2 * (2 * TB * flat * 4 + TB * LATENT_PAD * 4)
    est = (2 * weight_bytes + 2 * b_packed.size * 4 + stream_bytes
           + TB * dec_in_pad * 4)
    vmem_limit = int(min(max(2 * est + (4 << 20), 32 << 20), 128 << 20))

    kernel = functools.partial(_fcae_kernel, widths=packed["widths"],
                               x_dim=X, dec_in_pad=dec_in_pad)
    out_flat, z_pad = pl.pallas_call(
        kernel,
        grid=grid,
        out_shape=(
            jax.ShapeDtypeStruct((B, flat), jnp.float32),
            jax.ShapeDtypeStruct((B, LATENT_PAD), jnp.float32),
        ),
        in_specs=in_specs,
        out_specs=out_specs,
        scratch_shapes=[pltpu.VMEM((TB, dec_in_pad), jnp.float32)],
        compiler_params=pltpu.CompilerParams(
            dimension_semantics=("parallel",),
            vmem_limit_bytes=vmem_limit),
    )(x_flat, b_packed, *weights)

    return out_flat.reshape(B, *x.shape[1:]), z_pad[:, :LATENT_DIM]


def fcae_reference(x, enc, dec):
    """Pure-JAX reference matching the kernel numerics (bf16 dot, f32 acc)."""
    B, T, X = x.shape
    bf = jnp.bfloat16

    def dot_bf16(h, W):
        return jnp.dot(h.astype(bf), W.astype(bf),
                       preferred_element_type=jnp.float32)

    h = x.reshape(B, T * X)
    for i, (W, b) in enumerate(enc):
        h = dot_bf16(h, W) + b
        if i < len(enc) - 1:
            h = jnp.maximum(h, 0.0)
    z = h
    h = jnp.concatenate([z, x[:, 0, :]], axis=1)
    for i, (W, b) in enumerate(dec):
        h = dot_bf16(h, W) + b
        if i < len(dec) - 1:
            h = jnp.maximum(h, 0.0)
    return h.reshape(B, T, X), z


if __name__ == "__main__":
    # input_dim = (T, X) = (8, 16) -> encoder input dim 128, ic_dim 16, batch 2.
    input_dim = (8, 16)
    B = 2

    key = jax.random.PRNGKey(0)
    key, kx = jax.random.split(key)
    x = jax.random.normal(kx, (B,) + input_dim, dtype=jnp.float32)

    enc, dec = init_params(key, input_dim)

    # pack once (device-resident weights), then run the kernel
    packed = jax.tree_util.tree_map(jax.block_until_ready,
                                    pack_params(enc, dec, input_dim))
    out, z = fcae_forward(x, packed)
    out = jax.block_until_ready(out)
    z = jax.block_until_ready(z)

    out_ref, z_ref = fcae_reference(x, enc, dec)
    assert out.shape == (B,) + input_dim
    assert z.shape == (B, LATENT_DIM)
    np.testing.assert_allclose(np.asarray(out), np.asarray(out_ref),
                               rtol=2e-3, atol=2e-3)
    np.testing.assert_allclose(np.asarray(z), np.asarray(z_ref),
                               rtol=2e-3, atol=2e-3)
    print("KERNEL_OK")
</pallas_src>

<mosaic_0001>
module attributes {stable_mosaic.version = 11 : i64} {
  func.func @_fcae_kernel(%arg0: i32, %arg1: memref<2x128xf32, #tpu.memory_space<vmem>>, %arg2: memref<12x256xf32, #tpu.memory_space<vmem>>, %arg3: memref<128x256xbf16, #tpu.memory_space<vmem>>, %arg4: memref<256x256xbf16, #tpu.memory_space<vmem>>, %arg5: memref<256x256xbf16, #tpu.memory_space<vmem>>, %arg6: memref<256x128xbf16, #tpu.memory_space<vmem>>, %arg7: memref<128x128xbf16, #tpu.memory_space<vmem>>, %arg8: memref<128x128xbf16, #tpu.memory_space<vmem>>, %arg9: memref<128x128xbf16, #tpu.memory_space<vmem>>, %arg10: memref<128x128xbf16, #tpu.memory_space<vmem>>, %arg11: memref<128x256xbf16, #tpu.memory_space<vmem>>, %arg12: memref<256x256xbf16, #tpu.memory_space<vmem>>, %arg13: memref<256x256xbf16, #tpu.memory_space<vmem>>, %arg14: memref<256x128xbf16, #tpu.memory_space<vmem>>, %arg15: memref<2x128xf32, #tpu.memory_space<vmem>>, %arg16: memref<2x128xf32, #tpu.memory_space<vmem>>, %arg17: memref<2x128xf32, #tpu.memory_space<vmem>>) attributes {dimension_semantics = [#tpu.dimension_semantics<parallel>], iteration_bounds = array<i64: 1>, scalar_prefetch = 0 : i64, scratch_operands = 1 : i64, tpu.core_type = #tpu.core_type<tc>, window_params = [{transform_indices = @transform_0, window_bounds = array<i64: 2, 128>}, {pipeline_mode = #tpu.pipeline_mode<synchronous>, transform_indices = @transform_1, window_bounds = array<i64: 12, 256>}, {pipeline_mode = #tpu.pipeline_mode<synchronous>, transform_indices = @transform_2, window_bounds = array<i64: 128, 256>}, {pipeline_mode = #tpu.pipeline_mode<synchronous>, transform_indices = @transform_3, window_bounds = array<i64: 256, 256>}, {pipeline_mode = #tpu.pipeline_mode<synchronous>, transform_indices = @transform_4, window_bounds = array<i64: 256, 256>}, {pipeline_mode = #tpu.pipeline_mode<synchronous>, transform_indices = @transform_5, window_bounds = array<i64: 256, 128>}, {pipeline_mode = #tpu.pipeline_mode<synchronous>, transform_indices = @transform_6, window_bounds = array<i64: 128, 128>}, {pipeline_mode = #tpu.pipeline_mode<synchronous>, transform_indices = @transform_7, window_bounds = array<i64: 128, 128>}, {pipeline_mode = #tpu.pipeline_mode<synchronous>, transform_indices = @transform_8, window_bounds = array<i64: 128, 128>}, {pipeline_mode = #tpu.pipeline_mode<synchronous>, transform_indices = @transform_9, window_bounds = array<i64: 128, 128>}, {pipeline_mode = #tpu.pipeline_mode<synchronous>, transform_indices = @transform_10, window_bounds = array<i64: 128, 256>}, {pipeline_mode = #tpu.pipeline_mode<synchronous>, transform_indices = @transform_11, window_bounds = array<i64: 256, 256>}, {pipeline_mode = #tpu.pipeline_mode<synchronous>, transform_indices = @transform_12, window_bounds = array<i64: 256, 256>}, {pipeline_mode = #tpu.pipeline_mode<synchronous>, transform_indices = @transform_13, window_bounds = array<i64: 256, 128>}, {transform_indices = @transform_14, window_bounds = array<i64: 2, 128>}, {transform_indices = @transform_15, window_bounds = array<i64: 2, 128>}]} {
    %c0 = arith.constant 0 : index
    %c0_0 = arith.constant 0 : index
    %0 = vector.load %arg1[%c0, %c0_0] : memref<2x128xf32, #tpu.memory_space<vmem>>, vector<2x128xf32>
    %c0_1 = arith.constant 0 : index
    %c0_2 = arith.constant 0 : index
    %1 = vector.load %arg1[%c0_1, %c0_2] : memref<2x128xf32, #tpu.memory_space<vmem>>, vector<2x16xf32>
    %2 = arith.truncf %0 : vector<2x128xf32> to vector<2x128xbf16>
    %c0_3 = arith.constant 0 : index
    %c0_4 = arith.constant 0 : index
    %3 = vector.load %arg3[%c0_3, %c0_4] : memref<128x256xbf16, #tpu.memory_space<vmem>>, vector<128x256xbf16>
    %cst = arith.constant dense<0.000000e+00> : vector<2x256xf32>
    %4 = tpu.matmul %2, %3, %cst {dimension_numbers = #tpu.dot_dimension_numbers<[1], [0], [0], [1], [0, 0, 1, 1], [], []>} : vector<2x128xbf16>, vector<128x256xbf16>, vector<2x256xf32> -> vector<2x256xf32>
    %c0_5 = arith.constant 0 : index
    %c0_6 = arith.constant 0 : index
    %5 = vector.load %arg2[%c0_5, %c0_6] : memref<12x256xf32, #tpu.memory_space<vmem>>, vector<1x256xf32>
    %6 = vector.broadcast %5 : vector<1x256xf32> to vector<2x256xf32>
    %7 = arith.addf %4, %6 : vector<2x256xf32>
    %cst_7 = arith.constant 0.000000e+00 : f32
    %8 = vector.broadcast %cst_7 : f32 to vector<2x256xf32>
    %9 = arith.maximumf %7, %8 : vector<2x256xf32>
    %10 = arith.truncf %9 : vector<2x256xf32> to vector<2x256xbf16>
    %c0_8 = arith.constant 0 : index
    %c0_9 = arith.constant 0 : index
    %11 = vector.load %arg4[%c0_8, %c0_9] : memref<256x256xbf16, #tpu.memory_space<vmem>>, vector<256x256xbf16>
    %cst_10 = arith.constant dense<0.000000e+00> : vector<2x256xf32>
    %12 = tpu.matmul %10, %11, %cst_10 {dimension_numbers = #tpu.dot_dimension_numbers<[1], [0], [0], [1], [0, 0, 1, 1], [], []>} : vector<2x256xbf16>, vector<256x256xbf16>, vector<2x256xf32> -> vector<2x256xf32>
    %c1 = arith.constant 1 : index
    %c0_11 = arith.constant 0 : index
    %13 = vector.load %arg2[%c1, %c0_11] : memref<12x256xf32, #tpu.memory_space<vmem>>, vector<1x256xf32>
    %14 = vector.broadcast %13 : vector<1x256xf32> to vector<2x256xf32>
    %15 = arith.addf %12, %14 : vector<2x256xf32>
    %cst_12 = arith.constant 0.000000e+00 : f32
    %16 = vector.broadcast %cst_12 : f32 to vector<2x256xf32>
    %17 = arith.maximumf %15, %16 : vector<2x256xf32>
    %18 = arith.truncf %17 : vector<2x256xf32> to vector<2x256xbf16>
    %c0_13 = arith.constant 0 : index
    %c0_14 = arith.constant 0 : index
    %19 = vector.load %arg5[%c0_13, %c0_14] : memref<256x256xbf16, #tpu.memory_space<vmem>>, vector<256x256xbf16>
    %cst_15 = arith.constant dense<0.000000e+00> : vector<2x256xf32>
    %20 = tpu.matmul %18, %19, %cst_15 {dimension_numbers = #tpu.dot_dimension_numbers<[1], [0], [0], [1], [0, 0, 1, 1], [], []>} : vector<2x256xbf16>, vector<256x256xbf16>, vector<2x256xf32> -> vector<2x256xf32>
    %c2 = arith.constant 2 : index
    %c0_16 = arith.constant 0 : index
    %21 = vector.load %arg2[%c2, %c0_16] : memref<12x256xf32, #tpu.memory_space<vmem>>, vector<1x256xf32>
    %22 = vector.broadcast %21 : vector<1x256xf32> to vector<2x256xf32>
    %23 = arith.addf %20, %22 : vector<2x256xf32>
    %cst_17 = arith.constant 0.000000e+00 : f32
    %24 = vector.broadcast %cst_17 : f32 to vector<2x256xf32>
    %25 = arith.maximumf %23, %24 : vector<2x256xf32>
    %26 = arith.truncf %25 : vector<2x256xf32> to vector<2x256xbf16>
    %c0_18 = arith.constant 0 : index
    %c0_19 = arith.constant 0 : index
    %27 = vector.load %arg6[%c0_18, %c0_19] : memref<256x128xbf16, #tpu.memory_space<vmem>>, vector<256x128xbf16>
    %cst_20 = arith.constant dense<0.000000e+00> : vector<2x128xf32>
    %28 = tpu.matmul %26, %27, %cst_20 {dimension_numbers = #tpu.dot_dimension_numbers<[1], [0], [0], [1], [0, 0, 1, 1], [], []>} : vector<2x256xbf16>, vector<256x128xbf16>, vector<2x128xf32> -> vector<2x128xf32>
    %c3 = arith.constant 3 : index
    %c0_21 = arith.constant 0 : index
    %29 = vector.load %arg2[%c3, %c0_21] : memref<12x256xf32, #tpu.memory_space<vmem>>, vector<1x128xf32>
    %30 = vector.broadcast %29 : vector<1x128xf32> to vector<2x128xf32>
    %31 = arith.addf %28, %30 : vector<2x128xf32>
    %cst_22 = arith.constant 0.000000e+00 : f32
    %32 = vector.broadcast %cst_22 : f32 to vector<2x128xf32>
    %33 = arith.maximumf %31, %32 : vector<2x128xf32>
    %34 = arith.truncf %33 : vector<2x128xf32> to vector<2x128xbf16>
    %c0_23 = arith.constant 0 : index
    %c0_24 = arith.constant 0 : index
    %35 = vector.load %arg7[%c0_23, %c0_24] : memref<128x128xbf16, #tpu.memory_space<vmem>>, vector<128x128xbf16>
    %cst_25 = arith.constant dense<0.000000e+00> : vector<2x128xf32>
    %36 = tpu.matmul %34, %35, %cst_25 {dimension_numbers = #tpu.dot_dimension_numbers<[1], [0], [0], [1], [0, 0, 1, 1], [], []>} : vector<2x128xbf16>, vector<128x128xbf16>, vector<2x128xf32> -> vector<2x128xf32>
    %c4 = arith.constant 4 : index
    %c0_26 = arith.constant 0 : index
    %37 = vector.load %arg2[%c4, %c0_26] : memref<12x256xf32, #tpu.memory_space<vmem>>, vector<1x128xf32>
    %38 = vector.broadcast %37 : vector<1x128xf32> to vector<2x128xf32>
    %39 = arith.addf %36, %38 : vector<2x128xf32>
    %cst_27 = arith.constant 0.000000e+00 : f32
    %40 = vector.broadcast %cst_27 : f32 to vector<2x128xf32>
    %41 = arith.maximumf %39, %40 : vector<2x128xf32>
    %42 = arith.truncf %41 : vector<2x128xf32> to vector<2x128xbf16>
    %c0_28 = arith.constant 0 : index
    %c0_29 = arith.constant 0 : index
    %43 = vector.load %arg8[%c0_28, %c0_29] : memref<128x128xbf16, #tpu.memory_space<vmem>>, vector<128x128xbf16>
    %cst_30 = arith.constant dense<0.000000e+00> : vector<2x128xf32>
    %44 = tpu.matmul %42, %43, %cst_30 {dimension_numbers = #tpu.dot_dimension_numbers<[1], [0], [0], [1], [0, 0, 1, 1], [], []>} : vector<2x128xbf16>, vector<128x128xbf16>, vector<2x128xf32> -> vector<2x128xf32>
    %c5 = arith.constant 5 : index
    %c0_31 = arith.constant 0 : index
    %45 = vector.load %arg2[%c5, %c0_31] : memref<12x256xf32, #tpu.memory_space<vmem>>, vector<1x128xf32>
    %46 = vector.broadcast %45 : vector<1x128xf32> to vector<2x128xf32>
    %47 = arith.addf %44, %46 : vector<2x128xf32>
    %c0_32 = arith.constant 0 : index
    %c0_33 = arith.constant 0 : index
    %48 = vector.load %arg16[%c0_32, %c0_33] : memref<2x128xf32, #tpu.memory_space<vmem>>, vector<2x128xf32>
    tpu.vector_store %arg16[%c0_32, %c0_33], %47 {strides = array<i32>} : memref<2x128xf32, #tpu.memory_space<vmem>>, vector<2x128xf32>,
    %c0_34 = arith.constant 0 : index
    %c0_35 = arith.constant 0 : index
    %49 = vector.load %arg17[%c0_34, %c0_35] : memref<2x128xf32, #tpu.memory_space<vmem>>, vector<2x128xf32>
    tpu.vector_store %arg17[%c0_34, %c0_35], %47 {strides = array<i32>} : memref<2x128xf32, #tpu.memory_space<vmem>>, vector<2x128xf32>,
    %c0_36 = arith.constant 0 : index
    %c32 = arith.constant 32 : index
    %50 = vector.load %arg17[%c0_36, %c32] : memref<2x128xf32, #tpu.memory_space<vmem>>, vector<2x16xf32>
    tpu.vector_store %arg17[%c0_36, %c32], %1 {strides = array<i32>} : memref<2x128xf32, #tpu.memory_space<vmem>>, vector<2x16xf32>,
    %c0_37 = arith.constant 0 : index
    %c0_38 = arith.constant 0 : index
    %51 = vector.load %arg17[%c0_37, %c0_38] : memref<2x128xf32, #tpu.memory_space<vmem>>, vector<2x128xf32>
    %52 = arith.truncf %51 : vector<2x128xf32> to vector<2x128xbf16>
    %c0_39 = arith.constant 0 : index
    %c0_40 = arith.constant 0 : index
    %53 = vector.load %arg9[%c0_39, %c0_40] : memref<128x128xbf16, #tpu.memory_space<vmem>>, vector<128x128xbf16>
    %cst_41 = arith.constant dense<0.000000e+00> : vector<2x128xf32>
    %54 = tpu.matmul %52, %53, %cst_41 {dimension_numbers = #tpu.dot_dimension_numbers<[1], [0], [0], [1], [0, 0, 1, 1], [], []>} : vector<2x128xbf16>, vector<128x128xbf16>, vector<2x128xf32> -> vector<2x128xf32>
    %c6 = arith.constant 6 : index
    %c0_42 = arith.constant 0 : index
    %55 = vector.load %arg2[%c6, %c0_42] : memref<12x256xf32, #tpu.memory_space<vmem>>, vector<1x128xf32>
    %56 = vector.broadcast %55 : vector<1x128xf32> to vector<2x128xf32>
    %57 = arith.addf %54, %56 : vector<2x128xf32>
    %cst_43 = arith.constant 0.000000e+00 : f32
    %58 = vector.broadcast %cst_43 : f32 to vector<2x128xf32>
    %59 = arith.maximumf %57, %58 : vector<2x128xf32>
    %60 = arith.truncf %59 : vector<2x128xf32> to vector<2x128xbf16>
    %c0_44 = arith.constant 0 : index
    %c0_45 = arith.constant 0 : index
    %61 = vector.load %arg10[%c0_44, %c0_45] : memref<128x128xbf16, #tpu.memory_space<vmem>>, vector<128x128xbf16>
    %cst_46 = arith.constant dense<0.000000e+00> : vector<2x128xf32>
    %62 = tpu.matmul %60, %61, %cst_46 {dimension_numbers = #tpu.dot_dimension_numbers<[1], [0], [0], [1], [0, 0, 1, 1], [], []>} : vector<2x128xbf16>, vector<128x128xbf16>, vector<2x128xf32> -> vector<2x128xf32>
    %c7 = arith.constant 7 : index
    %c0_47 = arith.constant 0 : index
    %63 = vector.load %arg2[%c7, %c0_47] : memref<12x256xf32, #tpu.memory_space<vmem>>, vector<1x128xf32>
    %64 = vector.broadcast %63 : vector<1x128xf32> to vector<2x128xf32>
    %65 = arith.addf %62, %64 : vector<2x128xf32>
    %cst_48 = arith.constant 0.000000e+00 : f32
    %66 = vector.broadcast %cst_48 : f32 to vector<2x128xf32>
    %67 = arith.maximumf %65, %66 : vector<2x128xf32>
    %68 = arith.truncf %67 : vector<2x128xf32> to vector<2x128xbf16>
    %c0_49 = arith.constant 0 : index
    %c0_50 = arith.constant 0 : index
    %69 = vector.load %arg11[%c0_49, %c0_50] : memref<128x256xbf16, #tpu.memory_space<vmem>>, vector<128x256xbf16>
    %cst_51 = arith.constant dense<0.000000e+00> : vector<2x256xf32>
    %70 = tpu.matmul %68, %69, %cst_51 {dimension_numbers = #tpu.dot_dimension_numbers<[1], [0], [0], [1], [0, 0, 1, 1], [], []>} : vector<2x128xbf16>, vector<128x256xbf16>, vector<2x256xf32> -> vector<2x256xf32>
    %c8 = arith.constant 8 : index
    %c0_52 = arith.constant 0 : index
    %71 = vector.load %arg2[%c8, %c0_52] : memref<12x256xf32, #tpu.memory_space<vmem>>, vector<1x256xf32>
    %72 = vector.broadcast %71 : vector<1x256xf32> to vector<2x256xf32>
    %73 = arith.addf %70, %72 : vector<2x256xf32>
    %cst_53 = arith.constant 0.000000e+00 : f32
    %74 = vector.broadcast %cst_53 : f32 to vector<2x256xf32>
    %75 = arith.maximumf %73, %74 : vector<2x256xf32>
    %76 = arith.truncf %75 : vector<2x256xf32> to vector<2x256xbf16>
    %c0_54 = arith.constant 0 : index
    %c0_55 = arith.constant 0 : index
    %77 = vector.load %arg12[%c0_54, %c0_55] : memref<256x256xbf16, #tpu.memory_space<vmem>>, vector<256x256xbf16>
    %cst_56 = arith.constant dense<0.000000e+00> : vector<2x256xf32>
    %78 = tpu.matmul %76, %77, %cst_56 {dimension_numbers = #tpu.dot_dimension_numbers<[1], [0], [0], [1], [0, 0, 1, 1], [], []>} : vector<2x256xbf16>, vector<256x256xbf16>, vector<2x256xf32> -> vector<2x256xf32>
    %c9 = arith.constant 9 : index
    %c0_57 = arith.constant 0 : index
    %79 = vector.load %arg2[%c9, %c0_57] : memref<12x256xf32, #tpu.memory_space<vmem>>, vector<1x256xf32>
    %80 = vector.broadcast %79 : vector<1x256xf32> to vector<2x256xf32>
    %81 = arith.addf %78, %80 : vector<2x256xf32>
    %cst_58 = arith.constant 0.000000e+00 : f32
    %82 = vector.broadcast %cst_58 : f32 to vector<2x256xf32>
    %83 = arith.maximumf %81, %82 : vector<2x256xf32>
    %84 = arith.truncf %83 : vector<2x256xf32> to vector<2x256xbf16>
    %c0_59 = arith.constant 0 : index
    %c0_60 = arith.constant 0 : index
    %85 = vector.load %arg13[%c0_59, %c0_60] : memref<256x256xbf16, #tpu.memory_space<vmem>>, vector<256x256xbf16>
    %cst_61 = arith.constant dense<0.000000e+00> : vector<2x256xf32>
    %86 = tpu.matmul %84, %85, %cst_61 {dimension_numbers = #tpu.dot_dimension_numbers<[1], [0], [0], [1], [0, 0, 1, 1], [], []>} : vector<2x256xbf16>, vector<256x256xbf16>, vector<2x256xf32> -> vector<2x256xf32>
    %c10 = arith.constant 10 : index
    %c0_62 = arith.constant 0 : index
    %87 = vector.load %arg2[%c10, %c0_62] : memref<12x256xf32, #tpu.memory_space<vmem>>, vector<1x256xf32>
    %88 = vector.broadcast %87 : vector<1x256xf32> to vector<2x256xf32>
    %89 = arith.addf %86, %88 : vector<2x256xf32>
    %cst_63 = arith.constant 0.000000e+00 : f32
    %90 = vector.broadcast %cst_63 : f32 to vector<2x256xf32>
    %91 = arith.maximumf %89, %90 : vector<2x256xf32>
    %92 = arith.truncf %91 : vector<2x256xf32> to vector<2x256xbf16>
    %c0_64 = arith.constant 0 : index
    %c0_65 = arith.constant 0 : index
    %93 = vector.load %arg14[%c0_64, %c0_65] : memref<256x128xbf16, #tpu.memory_space<vmem>>, vector<256x128xbf16>
    %cst_66 = arith.constant dense<0.000000e+00> : vector<2x128xf32>
    %94 = tpu.matmul %92, %93, %cst_66 {dimension_numbers = #tpu.dot_dimension_numbers<[1], [0], [0], [1], [0, 0, 1, 1], [], []>} : vector<2x256xbf16>, vector<256x128xbf16>, vector<2x128xf32> -> vector<2x128xf32>
    %c11 = arith.constant 11 : index
    %c0_67 = arith.constant 0 : index
    %95 = vector.load %arg2[%c11, %c0_67] : memref<12x256xf32, #tpu.memory_space<vmem>>, vector<1x128xf32>
    %96 = vector.broadcast %95 : vector<1x128xf32> to vector<2x128xf32>
    %97 = arith.addf %94, %96 : vector<2x128xf32>
    %c0_68 = arith.constant 0 : index
    %c0_69 = arith.constant 0 : index
    %98 = vector.load %arg15[%c0_68, %c0_69] : memref<2x128xf32, #tpu.memory_space<vmem>>, vector<2x128xf32>
    tpu.vector_store %arg15[%c0_68, %c0_69], %97 {strides = array<i32>} : memref<2x128xf32, #tpu.memory_space<vmem>>, vector<2x128xf32>,
    return
  }
  func.func @transform_0(%arg0: i32) -> (i32, i32) {
    %c0_i32 = arith.constant 0 : i32
    %c0_i32_0 = arith.constant 0 : i32
    return %arg0, %c0_i32 : i32, i32
  }
  func.func @transform_1(%arg0: i32) -> (i32, i32) {
    %c0_i32 = arith.constant 0 : i32
    %c0_i32_0 = arith.constant 0 : i32
    %c0_i32_1 = arith.constant 0 : i32
    return %c0_i32, %c0_i32_0 : i32, i32
  }
  func.func @transform_2(%arg0: i32) -> (i32, i32) {
    %c0_i32 = arith.constant 0 : i32
    %c0_i32_0 = arith.constant 0 : i32
    %c0_i32_1 = arith.constant 0 : i32
    return %c0_i32, %c0_i32_0 : i32, i32
  }
  func.func @transform_3(%arg0: i32) -> (i32, i32) {
    %c0_i32 = arith.constant 0 : i32
    %c0_i32_0 = arith.constant 0 : i32
    %c0_i32_1 = arith.constant 0 : i32
    return %c0_i32, %c0_i32_0 : i32, i32
  }
  func.func @transform_4(%arg0: i32) -> (i32, i32) {
    %c0_i32 = arith.constant 0 : i32
    %c0_i32_0 = arith.constant 0 : i32
    %c0_i32_1 = arith.constant 0 : i32
    return %c0_i32, %c0_i32_0 : i32, i32
  }
  func.func @transform_5(%arg0: i32) -> (i32, i32) {
    %c0_i32 = arith.constant 0 : i32
    %c0_i32_0 = arith.constant 0 : i32
    %c0_i32_1 = arith.constant 0 : i32
    return %c0_i32, %c0_i32_0 : i32, i32
  }
  func.func @transform_6(%arg0: i32) -> (i32, i32) {
    %c0_i32 = arith.constant 0 : i32
    %c0_i32_0 = arith.constant 0 : i32
    %c0_i32_1 = arith.constant 0 : i32
    return %c0_i32, %c0_i32_0 : i32, i32
  }
  func.func @transform_7(%arg0: i32) -> (i32, i32) {
    %c0_i32 = arith.constant 0 : i32
    %c0_i32_0 = arith.constant 0 : i32
    %c0_i32_1 = arith.constant 0 : i32
    return %c0_i32, %c0_i32_0 : i32, i32
  }
  func.func @transform_8(%arg0: i32) -> (i32, i32) {
    %c0_i32 = arith.constant 0 : i32
    %c0_i32_0 = arith.constant 0 : i32
    %c0_i32_1 = arith.constant 0 : i32
    return %c0_i32, %c0_i32_0 : i32, i32
  }
  func.func @transform_9(%arg0: i32) -> (i32, i32) {
    %c0_i32 = arith.constant 0 : i32
    %c0_i32_0 = arith.constant 0 : i32
    %c0_i32_1 = arith.constant 0 : i32
    return %c0_i32, %c0_i32_0 : i32, i32
  }
  func.func @transform_10(%arg0: i32) -> (i32, i32) {
    %c0_i32 = arith.constant 0 : i32
    %c0_i32_0 = arith.constant 0 : i32
    %c0_i32_1 = arith.constant 0 : i32
    return %c0_i32, %c0_i32_0 : i32, i32
  }
  func.func @transform_11(%arg0: i32) -> (i32, i32) {
    %c0_i32 = arith.constant 0 : i32
    %c0_i32_0 = arith.constant 0 : i32
    %c0_i32_1 = arith.constant 0 : i32
    return %c0_i32, %c0_i32_0 : i32, i32
  }
  func.func @transform_12(%arg0: i32) -> (i32, i32) {
    %c0_i32 = arith.constant 0 : i32
    %c0_i32_0 = arith.constant 0 : i32
    %c0_i32_1 = arith.constant 0 : i32
    return %c0_i32, %c0_i32_0 : i32, i32
  }
  func.func @transform_13(%arg0: i32) -> (i32, i32) {
    %c0_i32 = arith.constant 0 : i32
    %c0_i32_0 = arith.constant 0 : i32
    %c0_i32_1 = arith.constant 0 : i32
    return %c0_i32, %c0_i32_0 : i32, i32
  }
  func.func @transform_14(%arg0: i32) -> (i32, i32) {
    %c0_i32 = arith.constant 0 : i32
    %c0_i32_0 = arith.constant 0 : i32
    return %arg0, %c0_i32 : i32, i32
  }
  func.func @transform_15(%arg0: i32) -> (i32, i32) {
    %c0_i32 = arith.constant 0 : i32
    %c0_i32_0 = arith.constant 0 : i32
    return %arg0, %c0_i32 : i32, i32
  }
}

</mosaic_0001>

<bundles_post_ra>
// kernel: tpu_custom_call.1
= control target key start
LH: loop header
LB: loop body
LE: loop exit
PB: predicated region body
PF: predicated region fallthrough
CT: control target
= control target key end

     0   :  { %s3841_s0 = inlined_call_operand.hbm [shape: f32[2,128], index: 0, kind: input, shape index: {}]   ;;  %s3842_s1 = inlined_call_operand.hbm [shape: f32[12,256], index: 1, kind: input, shape index: {}]   ;;  %s3843_s2 = inlined_call_operand.hbm [shape: bf16[128,256], index: 2, kind: input, shape index: {}]   ;;  %s3844_s3 = inlined_call_operand.hbm [shape: bf16[256,256], index: 3, kind: input, shape index: {}]   ;;  %s3845_s4 = inlined_call_operand.hbm [shape: bf16[256,256], index: 4, kind: input, shape index: {}]   ;;  %s3846_s5 = inlined_call_operand.hbm [shape: bf16[256,128], index: 5, kind: input, shape index: {}]   ;;  %s3847_s6 = inlined_call_operand.hbm [shape: bf16[128,128], index: 6, kind: input, shape index: {}]   ;;  %s3848_s7 = inlined_call_operand.hbm [shape: bf16[128,128], index: 7, kind: input, shape index: {}]   ;;  %s3849_s8 = inlined_call_operand.hbm [shape: bf16[128,128], index: 8, kind: input, shape index: {}]   ;;  %s3850_s9 = inlined_call_operand.hbm [shape: bf16[128,128], index: 9, kind: input, shape index: {}]   ;;  %s3851_s10 = inlined_call_operand.hbm [shape: bf16[128,256], index: 10, kind: input, shape index: {}]   ;;  %s3852_s11 = inlined_call_operand.hbm [shape: bf16[256,256], index: 11, kind: input, shape index: {}]   ;;  %s3853_s12 = inlined_call_operand.hbm [shape: bf16[256,256], index: 12, kind: input, shape index: {}]   ;;  %s3854_s13 = inlined_call_operand.hbm [shape: bf16[256,128], index: 13, kind: input, shape index: {}]   ;;  %s3855_s14 = inlined_call_operand.hbm [shape: f32[2,128], index: 14, kind: output, shape index: {0}]   ;;  %s3856_s15 = inlined_call_operand.hbm [shape: f32[2,128], index: 15, kind: output, shape index: {1}]  }
   0x1   :  { %3858 = sst [smem:[#allocation39_spill]] %s3855_s14 }
   0x2   :  { %21 = vsyncpa [#allocation4], 0 }
   0x3   :  { %22 = vsyncpa [#allocation7], 0 }
   0x4   :  { %23 = vsyncpa [#allocation10], 0 }
   0x5   :  { %24 = vsyncpa [#allocation13], 0 }
   0x6   :  { %25 = vsyncpa [#allocation16], 0 }
   0x7   :  { %26 = vsyncpa [#allocation19], 0 }
   0x8   :  { %27 = vsyncpa [#allocation22], 0 }
   0x9   :  { %28 = vsyncpa [#allocation25], 0 }
   0xa   :  { %29 = vsyncpa [#allocation5], 0 }
   0xb   :  { %30 = vsyncpa [#allocation28], 0  ;;  %s3449_s18 = smov [#allocation6]   ;;  %s3077_s22 = scalar_lea.hbm %s3842_s1, 512 }
   0xc   :  { %s46_s19 = sshll.u32 %s3449_s18, 4  ;;  %p3078_p0 = scmp.ne.s32.totalorder %s3842_s1, %s3077_s22  ;;  %s47_s19 = int_to_ptr.vmem [resolvable:$true] %s46_s19 }
   0xd   :  { %p3081_p1 = scmp.lt.u32.totalorder %s3077_s22, %s3842_s1 }
   0xf   :  { %p3083_p2 = pnand %p3081_p1, %p3078_p0 }
  0x11   :  { %3086 = shalt.err (!%p3083_p2)
}
  0x12   :  { %s3087_s27 = scalar_lea.vmem %s47_s19, 512  ;;  %p3092_p4 = scmp.lt.s32.totalorder %s47_s19, %s47_s19 }
  0x13   :  { %p3088_p3 = scmp.ne.s32.totalorder %s47_s19, %s3087_s27  ;;  %p3093_p5 = scmp.lt.s32.totalorder %s3087_s27, %s3087_s27 }
  0x15   :  { %p3094_p6 = por %p3093_p5, %p3092_p4 }
  0x17   :  { %p3095_p7 = pnand %p3094_p6, %p3088_p3 }
  0x19   :  { %3098 = shalt.err (!%p3095_p7)
}
  0x1a   :  { %s3450_s28 = smov 256   ;;  %s3451_s29 = smov 16  }
  0x1b   :  { %52 = dma.hbm_to_vmem [thread:$0]  %s3842_s1, 512, %s47_s19, [#allocation7], %s3450_s28, %s3450_s28, %s3451_s29  }
  0x1c   :  { %s3452_s17 = smov [#allocation9]   ;;  %s3453_s20 = smov [#allocation12]  }
  0x1d   :  { %s70_s18 = sshll.u32 %s3452_s17, 4  ;;  %s94_s21 = sshll.u32 %s3453_s20, 4  ;;  %s71_s18 = int_to_ptr.vmem [resolvable:$true] %s70_s18  ;;  %s95_s21 = int_to_ptr.vmem [resolvable:$true] %s94_s21 }
  0x1e   :  { %s3099_s24 = scalar_lea.hbm %s3844_s3, 4096 }
  0x1f   :  { %p3100_p8 = scmp.ne.s32.totalorder %s3844_s3, %s3099_s24  ;;  %p3103_p9 = scmp.lt.u32.totalorder %s3099_s24, %s3844_s3 }
  0x21   :  { %p3105_p10 = pnand %p3103_p9, %p3100_p8 }
  0x23   :  { %3108 = shalt.err (!%p3105_p10)
}
  0x24   :  { %s3109_s1 = scalar_lea.vmem %s71_s18, 4096  ;;  %p3114_p12 = scmp.lt.s32.totalorder %s71_s18, %s71_s18 }
  0x25   :  { %p3110_p11 = scmp.ne.s32.totalorder %s71_s18, %s3109_s1  ;;  %p3115_p13 = scmp.lt.s32.totalorder %s3109_s1, %s3109_s1 }
  0x27   :  { %p3116_p0 = por %p3115_p13, %p3114_p12 }
  0x29   :  { %p3117_p1 = pnand %p3116_p0, %p3110_p11 }
  0x2b   :  { %3120 = shalt.err (!%p3117_p1)
}
  0x2c   :  { %s3454_s19 = smov 128   ;;  %s3455_s28 = smov 8  }
  0x2d   :  { %76 = dma.hbm_to_vmem [thread:$0]  %s3844_s3, 4096, %s71_s18, [#allocation10], %s3454_s19, %s3454_s19, %s3455_s28  }
  0x2e   :  { %s3121_s17 = scalar_lea.hbm %s3846_s5, 2048 }
  0x2f   :  { %p3122_p2 = scmp.ne.s32.totalorder %s3846_s5, %s3121_s17  ;;  %p3125_p3 = scmp.lt.u32.totalorder %s3121_s17, %s3846_s5 }
  0x31   :  { %p3127_p4 = pnand %p3125_p3, %p3122_p2 }
  0x33   :  { %3130 = shalt.err (!%p3127_p4)
}
  0x34   :  { %s3131_s25 = scalar_lea.vmem %s95_s21, 2048  ;;  %p3136_p6 = scmp.lt.s32.totalorder %s95_s21, %s95_s21 }
  0x35   :  { %p3132_p5 = scmp.ne.s32.totalorder %s95_s21, %s3131_s25  ;;  %p3137_p7 = scmp.lt.s32.totalorder %s3131_s25, %s3131_s25 }
  0x37   :  { %p3138_p8 = por %p3137_p7, %p3136_p6 }
  0x39   :  { %p3139_p9 = pnand %p3138_p8, %p3132_p5 }
  0x3b   :  { %3142 = shalt.err (!%p3139_p9)
}
  0x3c   :  { %s3456_s3 = smov 64   ;;  %s3457_s18 = smov 4  }
  0x3d   :  { %100 = dma.hbm_to_vmem [thread:$0]  %s3846_s5, 2048, %s95_s21, [#allocation13], %s3456_s3, %s3456_s3, %s3457_s18  }
  0x3e   :  { %s3458_s1 = smov [#allocation15]   ;;  %s3459_s30 = smov [#allocation18]  }
  0x3f   :  { %s118_s29 = sshll.u32 %s3458_s1, 4  ;;  %s142_s14 = sshll.u32 %s3459_s30, 4  ;;  %s119_s29 = int_to_ptr.vmem [resolvable:$true] %s118_s29  ;;  %s143_s14 = int_to_ptr.vmem [resolvable:$true] %s142_s14 }
  0x40   :  { %s3143_s20 = scalar_lea.hbm %s3848_s7, 1024 }
  0x41   :  { %p3144_p10 = scmp.ne.s32.totalorder %s3848_s7, %s3143_s20  ;;  %p3147_p11 = scmp.lt.u32.totalorder %s3143_s20, %s3848_s7 }
  0x43   :  { %p3149_p12 = pnand %p3147_p11, %p3144_p10 }
  0x45   :  { %3152 = shalt.err (!%p3149_p12)
}
  0x46   :  { %s3153_s5 = scalar_lea.vmem %s119_s29, 1024  ;;  %p3158_p0 = scmp.lt.s32.totalorder %s119_s29, %s119_s29 }
  0x47   :  { %p3154_p13 = scmp.ne.s32.totalorder %s119_s29, %s3153_s5  ;;  %p3159_p1 = scmp.lt.s32.totalorder %s3153_s5, %s3153_s5 }
  0x49   :  { %p3160_p2 = por %p3159_p1, %p3158_p0 }
  0x4b   :  { %p3161_p3 = pnand %p3160_p2, %p3154_p13 }
  0x4d   :  { %3164 = shalt.err (!%p3161_p3)
}
  0x4e   :  { %124 = dma.hbm_to_vmem [thread:$0]  %s3848_s7, 1024, %s119_s29, [#allocation16], %s3456_s3, %s3456_s3, %s3457_s18  }
  0x4f   :  { %s3165_s30 = scalar_lea.hbm %s3850_s9, 1024 }
  0x50   :  { %p3166_p4 = scmp.ne.s32.totalorder %s3850_s9, %s3165_s30  ;;  %p3169_p5 = scmp.lt.u32.totalorder %s3165_s30, %s3850_s9 }
  0x52   :  { %p3171_p6 = pnand %p3169_p5, %p3166_p4 }
  0x54   :  { %3174 = shalt.err (!%p3171_p6)
}
  0x55   :  { %s3175_s23 = scalar_lea.vmem %s143_s14, 1024  ;;  %p3180_p8 = scmp.lt.s32.totalorder %s143_s14, %s143_s14 }
  0x56   :  { %p3176_p7 = scmp.ne.s32.totalorder %s143_s14, %s3175_s23  ;;  %p3181_p9 = scmp.lt.s32.totalorder %s3175_s23, %s3175_s23 }
  0x58   :  { %p3182_p10 = por %p3181_p9, %p3180_p8 }
  0x5a   :  { %p3183_p11 = pnand %p3182_p10, %p3176_p7 }
  0x5c   :  { %3186 = shalt.err (!%p3183_p11)
}
  0x5d   :  { %148 = dma.hbm_to_vmem [thread:$0]  %s3850_s9, 1024, %s143_s14, [#allocation19], %s3456_s3, %s3456_s3, %s3457_s18  }
  0x5e   :  { %s3460_s24 = smov [#allocation21]   ;;  %s3461_s5 = smov [#allocation3]  }
  0x5f   :  { %s166_s25 = sshll.u32 %s3460_s24, 4  ;;  %s37_s21 = sshll.u32 %s3461_s5, 4  ;;  %s167_s25 = int_to_ptr.vmem [resolvable:$true] %s166_s25  ;;  %s38_s21 = int_to_ptr.vmem [resolvable:$true] %s37_s21 }
  0x60   :  { %s3187_s1 = scalar_lea.hbm %s3852_s11, 4096 }
  0x61   :  { %p3188_p12 = scmp.ne.s32.totalorder %s3852_s11, %s3187_s1  ;;  %p3191_p13 = scmp.lt.u32.totalorder %s3187_s1, %s3852_s11 }
  0x63   :  { %p3193_p0 = pnand %p3191_p13, %p3188_p12 }
  0x65   :  { %3196 = shalt.err (!%p3193_p0)
}
  0x66   :  { %s3197_s9 = scalar_lea.vmem %s167_s25, 4096  ;;  %p3202_p2 = scmp.lt.s32.totalorder %s167_s25, %s167_s25 }
  0x67   :  { %p3198_p1 = scmp.ne.s32.totalorder %s167_s25, %s3197_s9  ;;  %p3203_p3 = scmp.lt.s32.totalorder %s3197_s9, %s3197_s9 }
  0x69   :  { %p3204_p4 = por %p3203_p3, %p3202_p2 }
  0x6b   :  { %p3205_p5 = pnand %p3204_p4, %p3198_p1 }
  0x6d   :  { %3208 = shalt.err (!%p3205_p5)
}
  0x6e   :  { %172 = dma.hbm_to_vmem [thread:$0]  %s3852_s11, 4096, %s167_s25, [#allocation22], %s3454_s19, %s3454_s19, %s3455_s28  }
  0x6f   :  { %s3209_s29 = scalar_lea.hbm %s3841_s0, 32 }
  0x70   :  { %p3210_p6 = scmp.ne.s32.totalorder %s3841_s0, %s3209_s29  ;;  %p3213_p7 = scmp.lt.u32.totalorder %s3209_s29, %s3841_s0 }
  0x72   :  { %p3215_p8 = pnand %p3213_p7, %p3210_p6 }
  0x74   :  { %3218 = shalt.err (!%p3215_p8)
}
  0x75   :  { %s3219_s1 = scalar_lea.vmem %s38_s21, 32  ;;  %p3224_p10 = scmp.lt.s32.totalorder %s38_s21, %s38_s21 }
  0x76   :  { %p3220_p9 = scmp.ne.s32.totalorder %s38_s21, %s3219_s1  ;;  %p3225_p11 = scmp.lt.s32.totalorder %s3219_s1, %s3219_s1 }
  0x78   :  { %p3226_p12 = por %p3225_p11, %p3224_p10 }
  0x7a   :  { %p3227_p13 = pnand %p3226_p12, %p3220_p9 }
  0x7c   :  { %3230 = shalt.err (!%p3227_p13)
}
  0x7d   :  { %40 = dma.hbm_to_vmem [thread:$0]  %s3841_s0, 32, %s38_s21, [#allocation4]  }
  0x7e   :  { %s3462_s30 = smov [#allocation8]   ;;  %s3463_s17 = smov [#allocation11]  }
  0x7f   :  { %s58_s16 = sshll.u32 %s3462_s30, 4  ;;  %s82_s20 = sshll.u32 %s3463_s17, 4  ;;  %s59_s16 = int_to_ptr.vmem [resolvable:$true] %s58_s16  ;;  %s83_s20 = int_to_ptr.vmem [resolvable:$true] %s82_s20 }
  0x80   :  { %s3231_s22 = scalar_lea.hbm %s3843_s2, 2048 }
  0x81   :  { %p3232_p0 = scmp.ne.s32.totalorder %s3843_s2, %s3231_s22  ;;  %p3235_p1 = scmp.lt.u32.totalorder %s3231_s22, %s3843_s2 }
  0x83   :  { %p3237_p2 = pnand %p3235_p1, %p3232_p0 }
  0x85   :  { %3240 = shalt.err (!%p3237_p2)
}
  0x86   :  { %s3241_s0 = scalar_lea.vmem %s59_s16, 2048  ;;  %p3246_p4 = scmp.lt.s32.totalorder %s59_s16, %s59_s16 }
  0x87   :  { %p3242_p3 = scmp.ne.s32.totalorder %s59_s16, %s3241_s0  ;;  %p3247_p5 = scmp.lt.s32.totalorder %s3241_s0, %s3241_s0 }
  0x89   :  { %p3248_p6 = por %p3247_p5, %p3246_p4 }
  0x8b   :  { %p3249_p7 = pnand %p3248_p6, %p3242_p3 }
  0x8d   :  { %3252 = shalt.err (!%p3249_p7)
}
  0x8e   :  { %64 = dma.hbm_to_vmem [thread:$0]  %s3843_s2, 2048, %s59_s16, [#allocation7], %s3454_s19, %s3454_s19, %s3455_s28  }
  0x8f   :  { %s3253_s1 = scalar_lea.hbm %s3845_s4, 4096 }
  0x90   :  { %p3254_p8 = scmp.ne.s32.totalorder %s3845_s4, %s3253_s1  ;;  %p3257_p9 = scmp.lt.u32.totalorder %s3253_s1, %s3845_s4 }
  0x92   :  { %p3259_p10 = pnand %p3257_p9, %p3254_p8 }
  0x94   :  { %3262 = shalt.err (!%p3259_p10)
}
  0x95   :  { %s3263_s9 = scalar_lea.vmem %s83_s20, 4096  ;;  %p3268_p12 = scmp.lt.s32.totalorder %s83_s20, %s83_s20 }
  0x96   :  { %p3264_p11 = scmp.ne.s32.totalorder %s83_s20, %s3263_s9  ;;  %p3269_p13 = scmp.lt.s32.totalorder %s3263_s9, %s3263_s9 }
  0x98   :  { %p3270_p0 = por %p3269_p13, %p3268_p12 }
  0x9a   :  { %p3271_p1 = pnand %p3270_p0, %p3264_p11 }
  0x9c   :  { %3274 = shalt.err (!%p3271_p1)
}
  0x9d   :  { %88 = dma.hbm_to_vmem [thread:$0]  %s3845_s4, 4096, %s83_s20, [#allocation10], %s3454_s19, %s3454_s19, %s3455_s28  }
  0x9e   :  { %s3464_s14 = smov [#allocation14]   ;;  %s3465_s23 = smov [#allocation17]  }
  0x9f   :  { %s106_s22 = sshll.u32 %s3464_s14, 4  ;;  %s130_s7 = sshll.u32 %s3465_s23, 4  ;;  %s107_s22 = int_to_ptr.vmem [resolvable:$true] %s106_s22  ;;  %s131_s7 = int_to_ptr.vmem [resolvable:$true] %s130_s7 }
  0xa0   :  { %s3275_s0 = scalar_lea.hbm %s3847_s6, 1024 }
  0xa1   :  { %p3276_p2 = scmp.ne.s32.totalorder %s3847_s6, %s3275_s0  ;;  %p3279_p3 = scmp.lt.u32.totalorder %s3275_s0, %s3847_s6 }
  0xa3   :  { %p3281_p4 = pnand %p3279_p3, %p3276_p2 }
  0xa5   :  { %3284 = shalt.err (!%p3281_p4)
}
  0xa6   :  { %s3285_s4 = scalar_lea.vmem %s107_s22, 1024  ;;  %p3290_p6 = scmp.lt.s32.totalorder %s107_s22, %s107_s22 }
  0xa7   :  { %p3286_p5 = scmp.ne.s32.totalorder %s107_s22, %s3285_s4  ;;  %p3291_p7 = scmp.lt.s32.totalorder %s3285_s4, %s3285_s4 }
  0xa9   :  { %p3292_p8 = por %p3291_p7, %p3290_p6 }
  0xab   :  { %p3293_p9 = pnand %p3292_p8, %p3286_p5 }
  0xad   :  { %3296 = shalt.err (!%p3293_p9)
}
  0xae   :  { %112 = dma.hbm_to_vmem [thread:$0]  %s3847_s6, 1024, %s107_s22, [#allocation13], %s3456_s3, %s3456_s3, %s3457_s18  }
  0xaf   :  { %s3297_s30 = scalar_lea.hbm %s3849_s8, 1024 }
  0xb0   :  { %p3298_p10 = scmp.ne.s32.totalorder %s3849_s8, %s3297_s30  ;;  %p3301_p11 = scmp.lt.u32.totalorder %s3297_s30, %s3849_s8 }
  0xb2   :  { %p3303_p12 = pnand %p3301_p11, %p3298_p10 }
  0xb4   :  { %3306 = shalt.err (!%p3303_p12)
}
  0xb5   :  { %s3307_s14 = scalar_lea.vmem %s131_s7, 1024  ;;  %p3312_p0 = scmp.lt.s32.totalorder %s131_s7, %s131_s7 }
  0xb6   :  { %p3308_p13 = scmp.ne.s32.totalorder %s131_s7, %s3307_s14  ;;  %p3313_p1 = scmp.lt.s32.totalorder %s3307_s14, %s3307_s14 }
  0xb8   :  { %p3314_p2 = por %p3313_p1, %p3312_p0 }
  0xba   :  { %p3315_p3 = pnand %p3314_p2, %p3308_p13 }
  0xbc   :  { %3318 = shalt.err (!%p3315_p3)
}
  0xbd   :  { %136 = dma.hbm_to_vmem [thread:$0]  %s3849_s8, 1024, %s131_s7, [#allocation16], %s3456_s3, %s3456_s3, %s3457_s18  }
  0xbe   :  { %s3466_s23 = smov [#allocation20]   ;;  %s3467_s24 = smov [#allocation23]  }
  0xbf   :  { %s154_s29 = sshll.u32 %s3466_s23, 4  ;;  %s178_s0 = sshll.u32 %s3467_s24, 4  ;;  %s155_s29 = int_to_ptr.vmem [resolvable:$true] %s154_s29  ;;  %s179_s0 = int_to_ptr.vmem [resolvable:$true] %s178_s0 }
  0xc0   :  { %s3319_s26 = scalar_lea.hbm %s3851_s10, 2048 }
  0xc1   :  { %p3320_p4 = scmp.ne.s32.totalorder %s3851_s10, %s3319_s26  ;;  %p3323_p5 = scmp.lt.u32.totalorder %s3319_s26, %s3851_s10 }
  0xc3   :  { %p3325_p6 = pnand %p3323_p5, %p3320_p4 }
  0xc5   :  { %3328 = shalt.err (!%p3325_p6)
}
  0xc6   :  { %s3329_s8 = scalar_lea.vmem %s155_s29, 2048  ;;  %p3334_p8 = scmp.lt.s32.totalorder %s155_s29, %s155_s29 }
  0xc7   :  { %p3330_p7 = scmp.ne.s32.totalorder %s155_s29, %s3329_s8  ;;  %p3335_p9 = scmp.lt.s32.totalorder %s3329_s8, %s3329_s8 }
  0xc9   :  { %p3336_p10 = por %p3335_p9, %p3334_p8 }
  0xcb   :  { %p3337_p11 = pnand %p3336_p10, %p3330_p7 }
  0xcd   :  { %3340 = shalt.err (!%p3337_p11)
}
  0xce   :  { %160 = dma.hbm_to_vmem [thread:$0]  %s3851_s10, 2048, %s155_s29, [#allocation19], %s3454_s19, %s3454_s19, %s3455_s28  }
  0xcf   :  { %s3341_s17 = scalar_lea.hbm %s3853_s12, 4096 }
  0xd0   :  { %p3342_p12 = scmp.ne.s32.totalorder %s3853_s12, %s3341_s17  ;;  %p3345_p13 = scmp.lt.u32.totalorder %s3341_s17, %s3853_s12 }
  0xd2   :  { %p3347_p0 = pnand %p3345_p13, %p3342_p12 }
  0xd4   :  { %3350 = shalt.err (!%p3347_p0)
}
  0xd5   :  { %s3351_s6 = scalar_lea.vmem %s179_s0, 4096  ;;  %p3356_p2 = scmp.lt.s32.totalorder %s179_s0, %s179_s0 }
  0xd6   :  { %p3352_p1 = scmp.ne.s32.totalorder %s179_s0, %s3351_s6  ;;  %p3357_p3 = scmp.lt.s32.totalorder %s3351_s6, %s3351_s6 }
  0xd8   :  { %p3358_p4 = por %p3357_p3, %p3356_p2 }
  0xda   :  { %p3359_p5 = pnand %p3358_p4, %p3352_p1 }
  0xdc   :  { %3362 = shalt.err (!%p3359_p5)
}
  0xdd   :  { %184 = dma.hbm_to_vmem [thread:$0]  %s3853_s12, 4096, %s179_s0, [#allocation22], %s3454_s19, %s3454_s19, %s3455_s28  }
  0xde   :  { %s3468_s23 = smov [#allocation24]   ;;  %s3363_s5 = scalar_lea.hbm %s3854_s13, 2048 }
  0xdf   :  { %s190_s29 = sshll.u32 %s3468_s23, 4  ;;  %p3364_p6 = scmp.ne.s32.totalorder %s3854_s13, %s3363_s5  ;;  %s191_s29 = int_to_ptr.vmem [resolvable:$true] %s190_s29 }
  0xe0   :  { %p3367_p7 = scmp.lt.u32.totalorder %s3363_s5, %s3854_s13 }
  0xe2   :  { %p3369_p8 = pnand %p3367_p7, %p3364_p6 }
  0xe4   :  { %3372 = shalt.err (!%p3369_p8)
}
  0xe5   :  { %s3373_s1 = scalar_lea.vmem %s191_s29, 2048  ;;  %p3378_p10 = scmp.lt.s32.totalorder %s191_s29, %s191_s29 }
  0xe6   :  { %p3374_p9 = scmp.ne.s32.totalorder %s191_s29, %s3373_s1  ;;  %p3379_p11 = scmp.lt.s32.totalorder %s3373_s1, %s3373_s1 }
  0xe8   :  { %p3380_p12 = por %p3379_p11, %p3378_p10 }
  0xea   :  { %p3381_p13 = pnand %p3380_p12, %p3374_p9 }
  0xec   :  { %3384 = shalt.err (!%p3381_p13)
}
  0xed   :  { %196 = dma.hbm_to_vmem [thread:$0]  %s3854_s13, 2048, %s191_s29, [#allocation25], %s3456_s3, %s3456_s3, %s3457_s18  }
  0xee   :  { %3429 = dma.done.wait [#allocation4], 32  }
  0xef   :  { %3430 = vsyncadd [#allocation4], 4294967264 }
  0xf0   :  { %3431 = dma.done.wait [#allocation7], 2560  }
  0xf1   :  { %3432 = vsyncadd [#allocation7], 4294964736 }
  0xf2   :  { %3433 = dma.done.wait [#allocation10], 8192  }
  0xf3   :  { %3434 = vsyncadd [#allocation10], 4294959104 }
  0xf4   :  { %3435 = dma.done.wait [#allocation13], 3072  }
  0xf5   :  { %3436 = vsyncadd [#allocation13], 4294964224 }
  0xf6   :  { %3437 = dma.done.wait [#allocation16], 2048  }
  0xf7   :  { %3438 = vsyncadd [#allocation16], 4294965248 }
  0xf8   :  { %3439 = dma.done.wait [#allocation19], 3072  }
  0xf9   :  { %3440 = vsyncadd [#allocation19], 4294964224 }
  0xfa   :  { %3441 = dma.done.wait [#allocation22], 8192  }
  0xfb   :  { %3442 = vsyncadd [#allocation22], 4294959104 }
  0xfc   :  { %3443 = dma.done.wait [#allocation25], 2048  }
  0xfd   :  { %3444 = vsyncadd [#allocation25], 4294965248  ;;  %v3469_v0 = vmov 0   ;;  %v2772_v1 = vld [vmem:[#allocation8 + $0x4] ss:$8 sps:$4 sm:$0xff]   ;;  %vm3471_vm0 = vmmov 0  }
  0xfe   :  { %382 = vmatprep.mubr.bf16.mxu0 %v3469_v0  ;;  %v2774_v2 = vld [vmem:[#allocation8] ss:$8 sps:$4 sm:$0xff]   ;;  %350 = vmatprep.subr.bf16.mxu0 %v2772_v1  ;;  %v2775_v3 = vld [vmem:[#allocation8 + $0x14] ss:$8 sps:$4 sm:$0xff]   ;;  %v2777_v4 = vld [vmem:[#allocation8 + $0x10] ss:$8 sps:$4 sm:$0xff]  }
  0xff   :  { %351 = vmatpush1.bf16.msra.mxu0 %v2774_v2  ;;  %v2778_v5 = vld [vmem:[#allocation8 + $0x24] ss:$8 sps:$4 sm:$0xff]   ;;  %v2780_v6 = vld [vmem:[#allocation8 + $0x20] ss:$8 sps:$4 sm:$0xff]   ;;  %v2781_v7 = vld [vmem:[#allocation8 + $0x34] ss:$8 sps:$4 sm:$0xff]  }
 0x100   :  { %352 = vmatprep.subr.bf16.mxu0 %v2775_v3  ;;  %v2783_v8 = vld [vmem:[#allocation8 + $0x30] ss:$8 sps:$4 sm:$0xff]   ;;  %v2784_v9 = vld [vmem:[#allocation8 + $0x44] ss:$8 sps:$4 sm:$0xff]   ;;  %v2798_v11 = vld [vmem:[#allocation9] ss:$8 sps:$4 sm:$0xff]  }
 0x101   :  { %v2796_v10 = vld [vmem:[#allocation9 + $0x4] ss:$8 sps:$4 sm:$0xff]   ;;  %v2799_v12 = vld [vmem:[#allocation9 + $0x14] ss:$8 sps:$4 sm:$0xff]   ;;  %v2786_v13 = vld [vmem:[#allocation8 + $0x40] ss:$8 sps:$4 sm:$0xff]  }
 0x102   :  { %600 = vmatprep.subr.bf16.mxu1 %v2796_v10  ;;  %v2801_v14 = vld [vmem:[#allocation9 + $0x10] ss:$8 sps:$4 sm:$0xff]   ;;  %v2802_v15 = vld [vmem:[#allocation9 + $0x24] ss:$8 sps:$4 sm:$0xff]   ;;  %v2787_v16 = vld [vmem:[#allocation8 + $0x54] ss:$8 sps:$4 sm:$0xff]  }
 0x103   :  { %353 = vmatpush1.bf16.msra.mxu0 %v2777_v4  ;;  %601 = vmatpush1.bf16.msra.mxu1 %v2798_v11  ;;  %v2789_v17 = vld [vmem:[#allocation8 + $0x50] ss:$8 sps:$4 sm:$0xff]   ;;  %v2804_v18 = vld [vmem:[#allocation9 + $0x20] ss:$8 sps:$4 sm:$0xff]   ;;  %v2805_v19 = vld [vmem:[#allocation9 + $0x34] ss:$8 sps:$4 sm:$0xff]  }
 0x104   :  { %354 = vmatprep.subr.bf16.mxu0 %v2778_v5  ;;  %602 = vmatprep.subr.bf16.mxu1 %v2799_v12  ;;  %v2790_v20 = vld [vmem:[#allocation8 + $0x64] ss:$8 sps:$4 sm:$0xff]   ;;  %v2792_v21 = vld [vmem:[#allocation8 + $0x60] ss:$8 sps:$4 sm:$0xff]   ;;  %v2807_v22 = vld [vmem:[#allocation9 + $0x30] ss:$8 sps:$4 sm:$0xff]  }
 0x105   :  { %v2808_v23 = vld [vmem:[#allocation9 + $0x44] ss:$8 sps:$4 sm:$0xff]   ;;  %v2793_v24 = vld [vmem:[#allocation8 + $0x74] ss:$8 sps:$4 sm:$0xff]   ;;  %v2795_v25 = vld [vmem:[#allocation8 + $0x70] ss:$8 sps:$4 sm:$0xff]  }
 0x106   :  { %v240_v26 = vld [vmem:[#allocation3] sm:$0x3]  ;;  %v2810_v27 = vld [vmem:[#allocation9 + $0x40] ss:$8 sps:$4 sm:$0xff]   ;;  %v2813_v29 = vld [vmem:[#allocation9 + $0x50] ss:$8 sps:$4 sm:$0xff]  }
 0x107   :  { %355 = vmatpush1.bf16.msra.mxu0 %v2780_v6  ;;  %603 = vmatpush1.bf16.msra.mxu1 %v2801_v14  ;;  %v2811_v28 = vld [vmem:[#allocation9 + $0x54] ss:$8 sps:$4 sm:$0xff]   ;;  %v241_v30 = vpack.c.bf16 %v240_v26, %v240_v26  ;;  %v2814_v31 = vld [vmem:[#allocation9 + $0x64] ss:$8 sps:$4 sm:$0xff]   ;;  %v2816_v32 = vld [vmem:[#allocation9 + $0x60] ss:$8 sps:$4 sm:$0xff]  }
 0x108   :  { %356 = vmatprep.subr.bf16.mxu0 %v2781_v7  ;;  %604 = vmatprep.subr.bf16.mxu1 %v2802_v15  ;;  %v2817_v33 = vld [vmem:[#allocation9 + $0x74] ss:$8 sps:$4 sm:$0xff]   ;;  %v2819_v34 = vld [vmem:[#allocation9 + $0x70] ss:$8 sps:$4 sm:$0xff]   ;;  %v2820_v35 = vld [vmem:[#allocation9 + $0x84] ss:$8 sps:$4 sm:$0xff]  }
 0x109   :  { %v2822_v36 = vld [vmem:[#allocation9 + $0x80] ss:$8 sps:$4 sm:$0xff]   ;;  %v2823_v37 = vld [vmem:[#allocation9 + $0x94] ss:$8 sps:$4 sm:$0xff]   ;;  %v2825_v38 = vld [vmem:[#allocation9 + $0x90] ss:$8 sps:$4 sm:$0xff]  }
 0x10a   :  { %v2826_v39 = vld [vmem:[#allocation9 + $0xa4] ss:$8 sps:$4 sm:$0xff]   ;;  %v2828_v40 = vld [vmem:[#allocation9 + $0xa0] ss:$8 sps:$4 sm:$0xff]   ;;  %v2829_v41 = vld [vmem:[#allocation9 + $0xb4] ss:$8 sps:$4 sm:$0xff]  }
 0x10b   :  { %357 = vmatpush1.bf16.msra.mxu0 %v2783_v8  ;;  %605 = vmatpush1.bf16.msra.mxu1 %v2804_v18  ;;  %v2831_v42 = vld [vmem:[#allocation9 + $0xb0] ss:$8 sps:$4 sm:$0xff]   ;;  %v2832_v43 = vld [vmem:[#allocation9 + $0xc4] ss:$8 sps:$4 sm:$0xff]   ;;  %v2834_v44 = vld [vmem:[#allocation9 + $0xc0] ss:$8 sps:$4 sm:$0xff]  }
 0x10c   :  { %358 = vmatprep.subr.bf16.mxu0 %v2784_v9  ;;  %606 = vmatprep.subr.bf16.mxu1 %v2805_v19  ;;  %v2835_v45 = vld [vmem:[#allocation9 + $0xd4] ss:$8 sps:$4 sm:$0xff]   ;;  %v2837_v46 = vld [vmem:[#allocation9 + $0xd0] ss:$8 sps:$4 sm:$0xff]   ;;  %v2838_v47 = vld [vmem:[#allocation9 + $0xe4] ss:$8 sps:$4 sm:$0xff]  }
 0x10d   :  { %v2840_v48 = vld [vmem:[#allocation9 + $0xe0] ss:$8 sps:$4 sm:$0xff]   ;;  %v2841_v49 = vld [vmem:[#allocation9 + $0xf4] ss:$8 sps:$4 sm:$0xff]   ;;  %v2843_v50 = vld [vmem:[#allocation9 + $0xf0] ss:$8 sps:$4 sm:$0xff]  }
 0x10e   :  { %v2844_v51 = vld [vmem:[#allocation11] ss:$8 sps:$4 sm:$0xff]   ;;  %v2846_v52 = vld [vmem:[#allocation11 + $0x4] ss:$8 sps:$4 sm:$0xff]   ;;  %v2849_v53 = vld [vmem:[#allocation11 + $0x14] ss:$8 sps:$4 sm:$0xff]  }
 0x10f   :  { %359 = vmatpush1.bf16.msra.mxu0 %v2786_v13  ;;  %607 = vmatpush1.bf16.msra.mxu1 %v2807_v22  ;;  %v2847_v54 = vld [vmem:[#allocation11 + $0x10] ss:$8 sps:$4 sm:$0xff]   ;;  %v2852_v55 = vld [vmem:[#allocation11 + $0x24] ss:$8 sps:$4 sm:$0xff]   ;;  %v2850_v56 = vld [vmem:[#allocation11 + $0x20] ss:$8 sps:$4 sm:$0xff]  }
 0x110   :  { %360 = vmatprep.subr.bf16.mxu0 %v2787_v16  ;;  %608 = vmatprep.subr.bf16.mxu1 %v2808_v23  ;;  %v2855_v57 = vld [vmem:[#allocation11 + $0x34] ss:$8 sps:$4 sm:$0xff]   ;;  %v2853_v58 = vld [vmem:[#allocation11 + $0x30] ss:$8 sps:$4 sm:$0xff]   ;;  %v2858_v59 = vld [vmem:[#allocation11 + $0x44] ss:$8 sps:$4 sm:$0xff]   ;;  %v260_v16 = vlaneseq }
 0x111   :  { %v2856_v60 = vld [vmem:[#allocation11 + $0x40] ss:$8 sps:$4 sm:$0xff]   ;;  %v2861_v61 = vld [vmem:[#allocation11 + $0x54] ss:$8 sps:$4 sm:$0xff]   ;;  %v2859_v62 = vld [vmem:[#allocation11 + $0x50] ss:$8 sps:$4 sm:$0xff]  }
 0x112   :  { %v2864_v63 = vld [vmem:[#allocation11 + $0x64] ss:$8 sps:$4 sm:$0xff]   ;;  %v2862_v1 = vld [vmem:[#allocation11 + $0x60] ss:$8 sps:$4 sm:$0xff]   ;;  %v2867_v2 = vld [vmem:[#allocation11 + $0x74] ss:$8 sps:$4 sm:$0xff]  }
 0x113   :  { %361 = vmatpush1.bf16.msra.mxu0 %v2789_v17  ;;  %609 = vmatpush1.bf16.msra.mxu1 %v2810_v27  ;;  %v2865_v3 = vld [vmem:[#allocation11 + $0x70] ss:$8 sps:$4 sm:$0xff]   ;;  %v2870_v4 = vld [vmem:[#allocation11 + $0x84] ss:$8 sps:$4 sm:$0xff]   ;;  %v2868_v5 = vld [vmem:[#allocation11 + $0x80] ss:$8 sps:$4 sm:$0xff]  }
 0x114   :  { %362 = vmatprep.subr.bf16.mxu0 %v2790_v20  ;;  %610 = vmatprep.subr.bf16.mxu1 %v2811_v28  ;;  %v2873_v6 = vld [vmem:[#allocation11 + $0x94] ss:$8 sps:$4 sm:$0xff]   ;;  %v2871_v7 = vld [vmem:[#allocation11 + $0x90] ss:$8 sps:$4 sm:$0xff]   ;;  %v2876_v8 = vld [vmem:[#allocation11 + $0xa4] ss:$8 sps:$4 sm:$0xff]  }
 0x115   :  { %v2874_v9 = vld [vmem:[#allocation11 + $0xa0] ss:$8 sps:$4 sm:$0xff]   ;;  %v2879_v10 = vld [vmem:[#allocation11 + $0xb4] ss:$8 sps:$4 sm:$0xff]   ;;  %v2877_v11 = vld [vmem:[#allocation11 + $0xb0] ss:$8 sps:$4 sm:$0xff]  }
 0x116   :  { %v2882_v12 = vld [vmem:[#allocation11 + $0xc4] ss:$8 sps:$4 sm:$0xff]   ;;  %v2880_v13 = vld [vmem:[#allocation11 + $0xc0] ss:$8 sps:$4 sm:$0xff]   ;;  %v2885_v14 = vld [vmem:[#allocation11 + $0xd4] ss:$8 sps:$4 sm:$0xff]  }
 0x117   :  { %363 = vmatpush1.bf16.msra.mxu0 %v2792_v21  ;;  %611 = vmatpush1.bf16.msra.mxu1 %v2813_v29  ;;  %v2883_v15 = vld [vmem:[#allocation11 + $0xd0] ss:$8 sps:$4 sm:$0xff]   ;;  %v261_v17 = vshrl.u32 %v260_v16, 7  ;;  %v258_v19 = vld [vmem:[#allocation6] ss:$8 sm:$0x3] }
 0x118   :  { %364 = vmatprep.subr.bf16.mxu0 %v2793_v24  ;;  %612 = vmatprep.subr.bf16.mxu1 %v2814_v31  ;;  %s3472_s13 = smov 32   ;;  %vm1284_vm1 = vcmask 386304   ;;  %s3473_s28 = smov [#allocation27]  }
 0x119   :  { %v3760_v18 = vsub.s32 0, %v261_v17  ;;  %v3762_v20 = vsub.s32 1, %v261_v17  ;;  %s2342_s3 = sshll.u32 %s3473_s28, 4  ;;  %s2343_s3 = int_to_ptr.vmem [resolvable:$true] %s2342_s3 }
 0x11a   :  { %s3385_s18 = scalar_lea.vmem %s2343_s3, 32  ;;  %p3390_p1 = scmp.lt.s32.totalorder %s2343_s3, %s2343_s3 }
 0x11b   :  { %365 = vmatpush1.bf16.msra.mxu0 %v2795_v25  ;;  %613 = vmatpush1.bf16.msra.mxu1 %v2816_v32  ;;  %v263_v21 = vrot.slane %v258_v19, %v3760_v18  ;;  %v267_v22 = vrot.slane %v258_v19, %v3762_v20  ;;  %p3386_p0 = scmp.ne.s32.totalorder %s2343_s3, %s3385_s18  ;;  %p3391_p2 = scmp.lt.s32.totalorder %s3385_s18, %s3385_s18 }
 0x11c   :  { %614 = vmatprep.subr.bf16.mxu1 %v2817_v33  ;;  %850 = vmatprep.subr.bf16.mxu0 %v2846_v52  ;;  %v2888_v33 = vld [vmem:[#allocation11 + $0xe4] ss:$8 sps:$4 sm:$0xff]  }
 0x11d   :  { %p3392_p3 = por %p3391_p2, %p3390_p1 }
 0x11e   :  { %383 = vmatmul.mubr.bf16.vlgmr.msra.gmra.mrb[0].mxu0 %v241_v30 }
 0x11f   :  { %615 = vmatpush1.bf16.msra.mxu1 %v2819_v34  ;;  %851 = vmatpush1.bf16.msra.mxu0 %v2844_v51  ;;  %v2886_v34 = vld [vmem:[#allocation11 + $0xe0] ss:$8 sps:$4 sm:$0xff]   ;;  %p3393_p4 = pnand %p3392_p3, %p3386_p0 }
 0x120   :  { %616 = vmatprep.subr.bf16.mxu1 %v2820_v35  ;;  %852 = vmatprep.subr.bf16.mxu0 %v2849_v53  ;;  %v2891_v35 = vld [vmem:[#allocation11 + $0xf4] ss:$8 sps:$4 sm:$0xff]  }
 0x123   :  { %617 = vmatpush1.bf16.msra.mxu1 %v2822_v36  ;;  %853 = vmatpush1.bf16.msra.mxu0 %v2847_v54  ;;  %v2889_v36 = vld [vmem:[#allocation11 + $0xf0] ss:$8 sps:$4 sm:$0xff]  }
 0x124   :  { %618 = vmatprep.subr.bf16.mxu1 %v2823_v37  ;;  %854 = vmatprep.subr.bf16.mxu0 %v2852_v55  ;;  %v2892_v37 = vld [vmem:[#allocation12 + $0x40] sm:$0xff]  }
 0x127   :  { %619 = vmatpush1.bf16.msra.mxu1 %v2825_v38  ;;  %855 = vmatpush1.bf16.msra.mxu0 %v2850_v56  ;;  %v2893_v38 = vld [vmem:[#allocation12] sm:$0xff]  }
 0x128   :  { %620 = vmatprep.subr.bf16.mxu1 %v2826_v39  ;;  %856 = vmatprep.subr.bf16.mxu0 %v2855_v57  ;;  %v2894_v39 = vld [vmem:[#allocation12 + $0x48] sm:$0xff]  }
 0x12b   :  { %621 = vmatpush1.bf16.msra.mxu1 %v2828_v40  ;;  %857 = vmatpush1.bf16.msra.mxu0 %v2853_v58  ;;  %v2895_v40 = vld [vmem:[#allocation12 + $0x8] sm:$0xff]  }
 0x12c   :  { %622 = vmatprep.subr.bf16.mxu1 %v2829_v41  ;;  %858 = vmatprep.subr.bf16.mxu0 %v2858_v59  ;;  %v2896_v41 = vld [vmem:[#allocation12 + $0x50] sm:$0xff]  }
 0x12f   :  { %623 = vmatpush1.bf16.msra.mxu1 %v2831_v42  ;;  %859 = vmatpush1.bf16.msra.mxu0 %v2856_v60  ;;  %v2897_v42 = vld [vmem:[#allocation12 + $0x10] sm:$0xff]  }
 0x130   :  { %624 = vmatprep.subr.bf16.mxu1 %v2832_v43  ;;  %860 = vmatprep.subr.bf16.mxu0 %v2861_v61  ;;  %v2898_v43 = vld [vmem:[#allocation12 + $0x58] sm:$0xff]  }
 0x133   :  { %625 = vmatpush1.bf16.msra.mxu1 %v2834_v44  ;;  %861 = vmatpush1.bf16.msra.mxu0 %v2859_v62  ;;  %v2899_v44 = vld [vmem:[#allocation12 + $0x18] sm:$0xff]   ;;  %v2904_v62 = vld [vmem:[#allocation12 + $0x70] sm:$0xff]  }
 0x134   :  { %626 = vmatprep.subr.bf16.mxu1 %v2835_v45  ;;  %862 = vmatprep.subr.bf16.mxu0 %v2864_v63  ;;  %v2900_v45 = vld [vmem:[#allocation12 + $0x60] sm:$0xff]   ;;  %v2905_v63 = vld [vmem:[#allocation12 + $0x30] sm:$0xff]  }
 0x137   :  { %627 = vmatpush1.bf16.msra.mxu1 %v2837_v46  ;;  %863 = vmatpush1.bf16.msra.mxu0 %v2862_v1  ;;  %v2901_v46 = vld [vmem:[#allocation12 + $0x20] sm:$0xff]   ;;  %v2906_v1 = vld [vmem:[#allocation12 + $0x78] sm:$0xff]  }
 0x138   :  { %628 = vmatprep.subr.bf16.mxu1 %v2838_v47  ;;  %864 = vmatprep.subr.bf16.mxu0 %v2867_v2  ;;  %v2902_v47 = vld [vmem:[#allocation12 + $0x68] sm:$0xff]   ;;  %v2907_v2 = vld [vmem:[#allocation12 + $0x38] sm:$0xff]  }
 0x13b   :  { %629 = vmatpush1.bf16.msra.mxu1 %v2840_v48  ;;  %865 = vmatpush1.bf16.msra.mxu0 %v2865_v3  ;;  %v2903_v48 = vld [vmem:[#allocation12 + $0x28] sm:$0xff]   ;;  %v2908_v3 = vld [vmem:[#allocation14] sm:$0xff]  }
 0x13c   :  { %630 = vmatprep.subr.bf16.mxu1 %v2841_v49  ;;  %866 = vmatprep.subr.bf16.mxu0 %v2870_v4  ;;  %v428_v49 = vld [vmem:[#allocation6 + $0x1] ss:$8 sm:$0x3]  ;;  %v3470_v4 = vmov 0.0  }
 0x13d   :  { %v437_v51 = vrot.slane %v428_v49, %v3762_v20 }
 0x13f   :  { %631 = vmatpush1.bf16.msra.mxu1 %v2843_v50  ;;  %867 = vmatpush1.bf16.msra.mxu0 %v2868_v5  ;;  %v433_v50 = vrot.slane %v428_v49, %v3760_v18  ;;  %v2909_v5 = vld [vmem:[#allocation14 + $0x8] sm:$0xff]   ;;  %v2928_v49 = vld [vmem:[#allocation17 + $0x20] sm:$0xff]  }
 0x140   :  { %868 = vmatprep.subr.bf16.mxu0 %v2873_v6  ;;  %2586 = vmatprep.subr.bf16.mxu1 %v2892_v37  ;;  %v2910_v6 = vld [vmem:[#allocation14 + $0x10] sm:$0xff]  }
 0x143   :  { %869 = vmatpush1.bf16.msra.mxu0 %v2871_v7  ;;  %v2911_v7 = vld [vmem:[#allocation14 + $0x18] sm:$0xff]  }
 0x144   :  { %870 = vmatprep.subr.bf16.mxu0 %v2876_v8  ;;  %v2912_v8 = vld [vmem:[#allocation14 + $0x20] sm:$0xff]  }
 0x147   :  { %871 = vmatpush1.bf16.msra.mxu0 %v2874_v9  ;;  %v2913_v9 = vld [vmem:[#allocation14 + $0x28] sm:$0xff]  }
 0x148   :  { %872 = vmatprep.subr.bf16.mxu0 %v2879_v10  ;;  %v678_v10 = vld [vmem:[#allocation6 + $0x2] ss:$8 sm:$0x3] }
 0x14b   :  { %873 = vmatpush1.bf16.msra.mxu0 %v2877_v11  ;;  %v683_v11 = vrot.slane %v678_v10, %v3760_v18 }
 0x14c   :  { %874 = vmatprep.subr.bf16.mxu0 %v2882_v12  ;;  %v687_v12 = vrot.slane %v678_v10, %v3762_v20 }
 0x14f   :  { %875 = vmatpush1.bf16.msra.mxu0 %v2880_v13 }
 0x150   :  { %876 = vmatprep.subr.bf16.mxu0 %v2885_v14 }
 0x153   :  { %877 = vmatpush1.bf16.msra.mxu0 %v2883_v15 }
 0x154   :  { %878 = vmatprep.subr.bf16.mxu0 %v2888_v33 }
 0x157   :  { %879 = vmatpush1.bf16.msra.mxu0 %v2886_v34  ;;  %v927_v34 = vld [vmem:[#allocation6 + $0x3] ss:$0 sm:$0xff] }
 0x158   :  { %880 = vmatprep.subr.bf16.mxu0 %v2891_v35 }
 0x15b   :  { %881 = vmatpush1.bf16.msra.mxu0 %v2889_v36 }
 0x15c   :  { %2666 = vmatprep.subr.bf16.mxu0 %v3470_v4 }
 0x1f1   :  { %v384_v23 = vpop.f32.mrb[0].mxu0 }
 0x1f2   :  { %v385_v24 = vadd.f32 %v384_v23, %v263_v21  ;;  %v386_v25 = vpop.f32.mrb[1].mxu0 }
 0x1f3   :  { %v387_v26 = vadd.f32 %v386_v25, %v267_v22  ;;  %v388_v27 = vpop.f32.mrb[2].mxu0  ;;  %v2914_v25 = vld [vmem:[#allocation14 + $0x30] sm:$0xff]  }
 0x1f4   :  { %v391_v28 = vmax.f32 %v385_v24, 0.0  ;;  %v389_v29 = vpop.f32.mrb[3].mxu0  ;;  %v2916_v27 = vld [vmem:[#allocation15] sm:$0xff]  }
 0x1f5   :  { %v392_v30 = vmax.f32 %v387_v26, 0.0  ;;  %v2915_v26 = vld [vmem:[#allocation14 + $0x38] sm:$0xff]   ;;  %v2918_v29 = vld [vmem:[#allocation15 + $0x10] sm:$0xff]  }
 0x1f6   :  { %v393_v32 = vpack.c.bf16 %v391_v28, %v391_v28  ;;  %v2917_v28 = vld [vmem:[#allocation15 + $0x8] sm:$0xff]  }
 0x1f7   :  { %v394_v31 = vpack.c.bf16 %v392_v30, %v392_v30  ;;  %v2919_v30 = vld [vmem:[#allocation15 + $0x18] sm:$0xff]  }
 0x1f9   :  { %632 = vmatprep.mubr.bf16.mxu1 %v394_v31  ;;  %v2920_v31 = vld [vmem:[#allocation15 + $0x20] sm:$0xff]  }
 0x1fa   :  { %633 = vmatmul.mubr.bf16.vlgmr.msra.gmra.mrb[0].mxu1 %v393_v32  ;;  %v2921_v32 = vld [vmem:[#allocation15 + $0x28] sm:$0xff]  }
 0x1fb   :  { %2587 = vmatpush3.bf16.msra.mxu1 %v2893_v38 }
 0x1fc   :  { %2588 = vmatprep.subr.bf16.mxu1 %v2894_v39 }
 0x1ff   :  { %2589 = vmatpush3.bf16.msra.mxu1 %v2895_v40 }
 0x200   :  { %2590 = vmatprep.subr.bf16.mxu1 %v2896_v41 }
 0x203   :  { %2591 = vmatpush3.bf16.msra.mxu1 %v2897_v42  ;;  %v2922_v42 = vld [vmem:[#allocation15 + $0x30] sm:$0xff]  }
 0x204   :  { %2592 = vmatprep.subr.bf16.mxu1 %v2898_v43  ;;  %v2923_v43 = vld [vmem:[#allocation15 + $0x38] sm:$0xff]  }
 0x207   :  { %2593 = vmatpush3.bf16.msra.mxu1 %v2899_v44  ;;  %v2924_v44 = vld [vmem:[#allocation17] sm:$0xff]  }
 0x208   :  { %2594 = vmatprep.subr.bf16.mxu1 %v2900_v45  ;;  %v3076_v45 = vld [vmem:[#allocation3] sm:$0x3] }
 0x209   :  { %1281 = vrot.lane.b32.xlu0 %v3076_v45, %s3472_s13  ;;  %v2970_v45 = vld [vmem:[#allocation21 + $0x20] ss:$8 sps:$4 sm:$0xff]  }
 0x20b   :  { %2595 = vmatpush3.bf16.msra.mxu1 %v2901_v46  ;;  %v2925_v46 = vld [vmem:[#allocation17 + $0x8] sm:$0xff]  }
 0x20c   :  { %2596 = vmatprep.subr.bf16.mxu1 %v2902_v47  ;;  %v2926_v47 = vld [vmem:[#allocation17 + $0x10] sm:$0xff]  }
 0x20f   :  { %2597 = vmatpush3.bf16.msra.mxu1 %v2903_v48  ;;  %v2927_v48 = vld [vmem:[#allocation17 + $0x18] sm:$0xff]  }
 0x210   :  { %2598 = vmatprep.subr.bf16.mxu1 %v2904_v62  ;;  %v2933_v62 = vld [vmem:[#allocation18 + $0x8] sm:$0xff]  }
 0x213   :  { %2599 = vmatpush3.bf16.msra.mxu1 %v2905_v63  ;;  %v2934_v63 = vld [vmem:[#allocation18 + $0x10] sm:$0xff]  }
 0x214   :  { %2600 = vmatprep.subr.bf16.mxu1 %v2906_v1  ;;  %v2935_v1 = vld [vmem:[#allocation18 + $0x18] sm:$0xff]  }
 0x217   :  { %2601 = vmatpush3.bf16.msra.mxu1 %v2907_v2  ;;  %v2936_v2 = vld [vmem:[#allocation18 + $0x20] sm:$0xff]  }
 0x218   :  { %2686 = vmatprep.subr.bf16.mxu1 %v3470_v4 }
 0x2cd   :  { %v634_v52 = vpop.f32.mrb[0].mxu1 }
 0x2ce   :  { %v635_v53 = vadd.f32 %v634_v52, %v433_v50  ;;  %v636_v54 = vpop.f32.mrb[1].mxu1  ;;  %v1082_v50 = vld [vmem:[#allocation6 + $0x4] ss:$0 sm:$0xff] }
 0x2cf   :  { %v637_v55 = vadd.f32 %v636_v54, %v437_v51  ;;  %v638_v56 = vpop.f32.mrb[2].mxu1 }
 0x2d0   :  { %v641_v57 = vmax.f32 %v635_v53, 0.0  ;;  %v639_v58 = vpop.f32.mrb[3].mxu1 }
 0x2d1   :  { %v642_v59 = vmax.f32 %v637_v55, 0.0  ;;  %v2929_v58 = vld [vmem:[#allocation17 + $0x28] sm:$0xff]  }
 0x2d2   :  { %v643_v61 = vpack.c.bf16 %v641_v57, %v641_v57 }
 0x2d3   :  { %v644_v60 = vpack.c.bf16 %v642_v59, %v642_v59  ;;  %v2930_v59 = vld [vmem:[#allocation17 + $0x30] sm:$0xff]  }
 0x2d5   :  { %882 = vmatprep.mubr.bf16.mxu0 %v644_v60  ;;  %v2931_v60 = vld [vmem:[#allocation17 + $0x38] sm:$0xff]  }
 0x2d6   :  { %883 = vmatmul.mubr.bf16.vlgmr.msra.gmra.mrb[4].mxu0 %v643_v61  ;;  %v2932_v61 = vld [vmem:[#allocation18] sm:$0xff]  }
 0x2d7   :  { %2667 = vmatpush3.bf16.msra.mxu0 %v2908_v3  ;;  %2682 = vmatprep.mubr.msk.bf16.mxu0 %vm3471_vm0, %v3470_v4  ;;  %v2937_v3 = vld [vmem:[#allocation18 + $0x28] sm:$0xff]  }
 0x2d8   :  { %2668 = vmatprep.subr.bf16.mxu0 %v3470_v4 }
 0x2db   :  { %2669 = vmatpush3.bf16.msra.mxu0 %v2909_v5  ;;  %v1189_v5 = vld [vmem:[#allocation6 + $0x5] ss:$0 sm:$0xff] }
 0x2dc   :  { %2670 = vmatprep.subr.bf16.mxu0 %v3470_v4 }
 0x2df   :  { %2671 = vmatpush3.bf16.msra.mxu0 %v2910_v6 }
 0x2e0   :  { %2672 = vmatprep.subr.bf16.mxu0 %v3470_v4 }
 0x2e3   :  { %2673 = vmatpush3.bf16.msra.mxu0 %v2911_v7 }
 0x2e4   :  { %2674 = vmatprep.subr.bf16.mxu0 %v3470_v4 }
 0x2e7   :  { %2675 = vmatpush3.bf16.msra.mxu0 %v2912_v8 }
 0x2e8   :  { %2676 = vmatprep.subr.bf16.mxu0 %v3470_v4 }
 0x2eb   :  { %2677 = vmatpush3.bf16.msra.mxu0 %v2913_v9  ;;  %v1282_v9 = vpop.permute.xlu0 %1281 }
 0x2ec   :  { %2678 = vmatprep.subr.bf16.mxu0 %v3470_v4 }
 0x2ef   :  { %2679 = vmatpush3.bf16.msra.mxu0 %v2914_v25  ;;  %v2954_v25 = vld [vmem:[#allocation20 + $0x44] ss:$8 sps:$4 sm:$0xff]  }
 0x2f0   :  { %2680 = vmatprep.subr.bf16.mxu0 %v3470_v4 }
 0x2f3   :  { %2681 = vmatpush3.bf16.msra.mxu0 %v2915_v26  ;;  %v2957_v26 = vld [vmem:[#allocation20 + $0x54] ss:$8 sps:$4 sm:$0xff]  }
 0x2f4   :  { %2706 = vmatprep.subr.bf16.mxu0 %v3470_v4 }
 0x3a9   :  { %v884_v13 = vpop.f32.mrb[4].mxu0 }
 0x3aa   :  { %v885_v14 = vadd.f32 %v884_v13, %v683_v11  ;;  %v886_v15 = vpop.f32.mrb[5].mxu0 }
 0x3ab   :  { %v887_v16 = vadd.f32 %v886_v15, %v687_v12  ;;  %v888_v17 = vpop.f32.mrb[6].mxu0  ;;  %v2939_v15 = vld [vmem:[#allocation18 + $0x38] sm:$0xff]  }
 0x3ac   :  { %v891_v19 = vmax.f32 %v885_v14, 0.0  ;;  %v889_v21 = vpop.f32.mrb[7].mxu0  ;;  %v2938_v14 = vld [vmem:[#allocation18 + $0x30] sm:$0xff]   ;;  %v2942_v17 = vld [vmem:[#allocation20 + $0x4] ss:$8 sps:$4 sm:$0xff]  }
 0x3ad   :  { %v892_v22 = vmax.f32 %v887_v16, 0.0  ;;  %v2940_v16 = vld [vmem:[#allocation20] ss:$8 sps:$4 sm:$0xff]   ;;  %v2943_v21 = vld [vmem:[#allocation20 + $0x10] ss:$8 sps:$4 sm:$0xff]  }
 0x3ae   :  { %v893_v24 = vpack.c.bf16 %v891_v19, %v891_v19  ;;  %v2945_v19 = vld [vmem:[#allocation20 + $0x14] ss:$8 sps:$4 sm:$0xff]  }
 0x3af   :  { %v894_v23 = vpack.c.bf16 %v892_v22, %v892_v22  ;;  %v2948_v22 = vld [vmem:[#allocation20 + $0x24] ss:$8 sps:$4 sm:$0xff]  }
 0x3b1   :  { %1056 = vmatprep.mubr.bf16.mxu1 %v894_v23  ;;  %v2946_v23 = vld [vmem:[#allocation20 + $0x20] ss:$8 sps:$4 sm:$0xff]  }
 0x3b2   :  { %1057 = vmatmul.mubr.bf16.vlgmr.msra.gmra.mrb[4].mxu1 %v893_v24  ;;  %v2951_v24 = vld [vmem:[#allocation20 + $0x34] ss:$8 sps:$4 sm:$0xff]  }
 0x3b3   :  { %2702 = vmatprep.mubr.msk.bf16.mxu1 %vm3471_vm0, %v3470_v4  ;;  %2687 = vmatpush3.bf16.msra.mxu1 %v2916_v27  ;;  %v2955_v27 = vld [vmem:[#allocation20 + $0x50] ss:$8 sps:$4 sm:$0xff]  }
 0x3b4   :  { %2688 = vmatprep.subr.bf16.mxu1 %v3470_v4 }
 0x3b7   :  { %2689 = vmatpush3.bf16.msra.mxu1 %v2917_v28  ;;  %v2960_v28 = vld [vmem:[#allocation20 + $0x64] ss:$8 sps:$4 sm:$0xff]  }
 0x3b8   :  { %2690 = vmatprep.subr.bf16.mxu1 %v3470_v4 }
 0x3bb   :  { %2691 = vmatpush3.bf16.msra.mxu1 %v2918_v29  ;;  %v2958_v29 = vld [vmem:[#allocation20 + $0x60] ss:$8 sps:$4 sm:$0xff]  }
 0x3bc   :  { %2692 = vmatprep.subr.bf16.mxu1 %v3470_v4 }
 0x3bf   :  { %2693 = vmatpush3.bf16.msra.mxu1 %v2919_v30  ;;  %v1304_v30 = vld [vmem:[#allocation6 + $0x6] ss:$0 sm:$0xff] }
 0x3c0   :  { %2694 = vmatprep.subr.bf16.mxu1 %v3470_v4 }
 0x3c3   :  { %2695 = vmatpush3.bf16.msra.mxu1 %v2920_v31 }
 0x3c4   :  { %2696 = vmatprep.subr.bf16.mxu1 %v3470_v4 }
 0x3c7   :  { %2697 = vmatpush3.bf16.msra.mxu1 %v2921_v32 }
 0x3c8   :  { %2698 = vmatprep.subr.bf16.mxu1 %v3470_v4 }
 0x3cb   :  { %2699 = vmatpush3.bf16.msra.mxu1 %v2922_v42  ;;  %v2969_v42 = vld [vmem:[#allocation21 + $0x14] ss:$8 sps:$4 sm:$0xff]  }
 0x3cc   :  { %2700 = vmatprep.subr.bf16.mxu1 %v3470_v4 }
 0x3cf   :  { %2701 = vmatpush3.bf16.msra.mxu1 %v2923_v43  ;;  %v2967_v43 = vld [vmem:[#allocation21 + $0x10] ss:$8 sps:$4 sm:$0xff]  }
 0x3d0   :  { %2726 = vmatprep.subr.bf16.mxu1 %v3470_v4 }
 0x485   :  { %v2602_v33 = vpop.f32.mrb[4].mxu1 }
 0x486   :  { %v2603_v35 = vpop.f32.mrb[5].mxu1 }
 0x487   :  { %v2604_v36 = vadd.f32 %v2603_v35, %v2602_v33  ;;  %v2605_v37 = vpop.f32.mrb[6].mxu1 }
 0x488   :  { %v2606_v38 = vpop.f32.mrb[7].mxu1 }
 0x489   :  { %v1059_v39 = vadd.f32 %v2604_v36, %v927_v34  ;;  %v2963_v38 = vld [vmem:[#allocation20 + $0x74] ss:$8 sps:$4 sm:$0xff]  }
 0x48b   :  { %v1064_v40 = vmax.f32 %v1059_v39, 0.0  ;;  %v2961_v39 = vld [vmem:[#allocation20 + $0x70] ss:$8 sps:$4 sm:$0xff]  }
 0x48d   :  { %v1065_v41 = vpack.c.bf16 %v1064_v40, %v1064_v40  ;;  %v2964_v40 = vld [vmem:[#allocation21] ss:$8 sps:$4 sm:$0xff]  }
 0x48f   :  { %2683 = vmatmul.mubr.bf16.vlgmr.msra.gmra.mrb[8].mxu0 %v1065_v41  ;;  %v2966_v41 = vld [vmem:[#allocation21 + $0x4] ss:$8 sps:$4 sm:$0xff]  }
 0x490   :  { %2722 = vmatprep.mubr.msk.bf16.mxu0 %vm3471_vm0, %v3470_v4  ;;  %2707 = vmatpush3.bf16.msra.mxu0 %v2924_v44  ;;  %v2972_v44 = vld [vmem:[#allocation21 + $0x24] ss:$8 sps:$4 sm:$0xff]  }
 0x491   :  { %2708 = vmatprep.subr.bf16.mxu0 %v3470_v4 }
 0x494   :  { %2709 = vmatpush3.bf16.msra.mxu0 %v2925_v46  ;;  %v2975_v46 = vld [vmem:[#allocation21 + $0x34] ss:$8 sps:$4 sm:$0xff]  }
 0x495   :  { %2710 = vmatprep.subr.bf16.mxu0 %v3470_v4 }
 0x498   :  { %2711 = vmatpush3.bf16.msra.mxu0 %v2926_v47  ;;  %v2973_v47 = vld [vmem:[#allocation21 + $0x30] ss:$8 sps:$4 sm:$0xff]  }
 0x499   :  { %2712 = vmatprep.subr.bf16.mxu0 %v3470_v4 }
 0x49c   :  { %2713 = vmatpush3.bf16.msra.mxu0 %v2927_v48  ;;  %v2978_v48 = vld [vmem:[#allocation21 + $0x44] ss:$8 sps:$4 sm:$0xff]  }
 0x49d   :  { %2714 = vmatprep.subr.bf16.mxu0 %v3470_v4 }
 0x4a0   :  { %2715 = vmatpush3.bf16.msra.mxu0 %v2928_v49  ;;  %v2976_v49 = vld [vmem:[#allocation21 + $0x40] ss:$8 sps:$4 sm:$0xff]  }
 0x4a1   :  { %2716 = vmatprep.subr.bf16.mxu0 %v3470_v4 }
 0x4a4   :  { %2717 = vmatpush3.bf16.msra.mxu0 %v2929_v58  ;;  %v2993_v58 = vld [vmem:[#allocation21 + $0x94] ss:$8 sps:$4 sm:$0xff]  }
 0x4a5   :  { %2718 = vmatprep.subr.bf16.mxu0 %v3470_v4 }
 0x4a8   :  { %2719 = vmatpush3.bf16.msra.mxu0 %v2930_v59  ;;  %v2991_v59 = vld [vmem:[#allocation21 + $0x90] ss:$8 sps:$4 sm:$0xff]  }
 0x4a9   :  { %2720 = vmatprep.subr.bf16.mxu0 %v3470_v4 }
 0x4ac   :  { %2721 = vmatpush3.bf16.msra.mxu0 %v2931_v60  ;;  %v2996_v60 = vld [vmem:[#allocation21 + $0xa4] ss:$8 sps:$4 sm:$0xff]  }
 0x4ad   :  { %1611 = vmatprep.subr.bf16.mxu0 %v2942_v17  ;;  %v3009_v17 = vld [vmem:[#allocation21 + $0xf0] ss:$8 sps:$4 sm:$0xff]  }
 0x562   :  { %v1165_v51 = vpop.f32.mrb[8].mxu0 }
 0x563   :  { %v1166_v52 = vadd.f32 %v1165_v51, %v1082_v50  ;;  %v2684_v53 = vpop.f32.mrb[9].mxu0  ;;  %v2981_v50 = vld [vmem:[#allocation21 + $0x54] ss:$8 sps:$4 sm:$0xff]   ;;  %v2979_v51 = vld [vmem:[#allocation21 + $0x50] ss:$8 sps:$4 sm:$0xff]  }
 0x564   :  { %v1168_v54 = vpop.f32.mrb[10].mxu0  ;;  %v2982_v53 = vld [vmem:[#allocation21 + $0x60] ss:$8 sps:$4 sm:$0xff]  }
 0x565   :  { %v1171_v55 = vmax.f32 %v1166_v52, 0.0  ;;  %v2685_v56 = vpop.f32.mrb[11].mxu0  ;;  %v2984_v52 = vld [vmem:[#allocation21 + $0x64] ss:$8 sps:$4 sm:$0xff]   ;;  %v2987_v54 = vld [vmem:[#allocation21 + $0x74] ss:$8 sps:$4 sm:$0xff]  }
 0x566   :  { %v2990_v56 = vld [vmem:[#allocation21 + $0x84] ss:$8 sps:$4 sm:$0xff]  }
 0x567   :  { %v1172_v57 = vpack.c.bf16 %v1171_v55, %v1171_v55  ;;  %v2985_v55 = vld [vmem:[#allocation21 + $0x70] ss:$8 sps:$4 sm:$0xff]  }
 0x569   :  { %2703 = vmatmul.mubr.bf16.vlgmr.msra.gmra.mrb[8].mxu1 %v1172_v57  ;;  %v2988_v57 = vld [vmem:[#allocation21 + $0x80] ss:$8 sps:$4 sm:$0xff]  }
 0x56a   :  { %2742 = vmatprep.mubr.msk.bf16.mxu1 %vm3471_vm0, %v3470_v4  ;;  %2727 = vmatpush3.bf16.msra.mxu1 %v2932_v61  ;;  %v2994_v61 = vld [vmem:[#allocation21 + $0xa0] ss:$8 sps:$4 sm:$0xff]  }
 0x56b   :  { %2728 = vmatprep.subr.bf16.mxu1 %v3470_v4 }
 0x56e   :  { %2729 = vmatpush3.bf16.msra.mxu1 %v2933_v62  ;;  %v2999_v62 = vld [vmem:[#allocation21 + $0xb4] ss:$8 sps:$4 sm:$0xff]  }
 0x56f   :  { %2730 = vmatprep.subr.bf16.mxu1 %v3470_v4 }
 0x572   :  { %2731 = vmatpush3.bf16.msra.mxu1 %v2934_v63  ;;  %v2997_v63 = vld [vmem:[#allocation21 + $0xb0] ss:$8 sps:$4 sm:$0xff]  }
 0x573   :  { %2732 = vmatprep.subr.bf16.mxu1 %v3470_v4 }
 0x576   :  { %2733 = vmatpush3.bf16.msra.mxu1 %v2935_v1  ;;  %v3002_v1 = vld [vmem:[#allocation21 + $0xc4] ss:$8 sps:$4 sm:$0xff]  }
 0x577   :  { %2734 = vmatprep.subr.bf16.mxu1 %v3470_v4 }
 0x57a   :  { %2735 = vmatpush3.bf16.msra.mxu1 %v2936_v2  ;;  %v3000_v2 = vld [vmem:[#allocation21 + $0xc0] ss:$8 sps:$4 sm:$0xff]  }
 0x57b   :  { %2736 = vmatprep.subr.bf16.mxu1 %v3470_v4 }
 0x57e   :  { %2737 = vmatpush3.bf16.msra.mxu1 %v2937_v3  ;;  %v3005_v3 = vld [vmem:[#allocation21 + $0xd4] ss:$8 sps:$4 sm:$0xff]  }
 0x57f   :  { %2738 = vmatprep.subr.bf16.mxu1 %v3470_v4 }
 0x582   :  { %2739 = vmatpush3.bf16.msra.mxu1 %v2938_v14  ;;  %v3008_v14 = vld [vmem:[#allocation21 + $0xe4] ss:$8 sps:$4 sm:$0xff]  }
 0x583   :  { %2740 = vmatprep.subr.bf16.mxu1 %v3470_v4  ;;  %v2952_v4 = vld [vmem:[#allocation20 + $0x40] ss:$8 sps:$4 sm:$0xff]  }
 0x586   :  { %2741 = vmatpush3.bf16.msra.mxu1 %v2939_v15  ;;  %v3006_v15 = vld [vmem:[#allocation21 + $0xe0] ss:$8 sps:$4 sm:$0xff]  }
 0x587   :  { %1861 = vmatprep.subr.bf16.mxu1 %v2966_v41  ;;  %v3045_v41 = vld [vmem:[#allocation23 + $0xb0] ss:$8 sps:$4 sm:$0xff]  }
 0x63c   :  { %v1272_v6 = vpop.f32.mrb[8].mxu1 }
 0x63d   :  { %v1273_v7 = vadd.f32 %v1272_v6, %v1189_v5  ;;  %v2704_v8 = vpop.f32.mrb[9].mxu1  ;;  %v3003_v5 = vld [vmem:[#allocation21 + $0xd0] ss:$8 sps:$4 sm:$0xff]   ;;  %v1411_v6 = vld [vmem:[#allocation6 + $0x7] ss:$0 sm:$0xff] }
 0x63e   :  { %v1275_v10 = vpop.f32.mrb[10].mxu1 }
 0x63f   :  { %1279 = vst [vmem:[#allocation2] sm:$0x3] %v1273_v7  ;;  %1278 = vst [vmem:[#allocation27] sm:$0x3] %v1273_v7  ;;  %v2705_v11 = vpop.f32.mrb[11].mxu1 }
 0x640   :  { %1285 = vst.msk [vmem:[#allocation2] sm:$0x3] %vm1284_vm1, %v1282_v9 }
 0x647   :  { %v1286_v12 = vld [vmem:[#allocation2] sm:$0x3] }
 0x648   :  { %v1287_v13 = vpack.c.bf16 %v1286_v12, %v1286_v12 }
 0x64a   :  { %2723 = vmatmul.mubr.bf16.vlgmr.msra.gmra.mrb[12].mxu0 %v1287_v13 }
 0x64b   :  { %1643 = vmatprep.mubr.bf16.mxu0 %v3469_v0  ;;  %1612 = vmatpush1.bf16.msra.mxu0 %v2940_v16  ;;  %v2949_v0 = vld [vmem:[#allocation20 + $0x30] ss:$8 sps:$4 sm:$0xff]   ;;  %v3011_v16 = vld [vmem:[#allocation21 + $0xf4] ss:$8 sps:$4 sm:$0xff]  }
 0x64c   :  { %1613 = vmatprep.subr.bf16.mxu0 %v2945_v19  ;;  %v3012_v19 = vld [vmem:[#allocation23] ss:$8 sps:$4 sm:$0xff]  }
 0x64f   :  { %1614 = vmatpush1.bf16.msra.mxu0 %v2943_v21  ;;  %v3014_v21 = vld [vmem:[#allocation23 + $0x4] ss:$8 sps:$4 sm:$0xff]  }
 0x650   :  { %1615 = vmatprep.subr.bf16.mxu0 %v2948_v22  ;;  %v3017_v22 = vld [vmem:[#allocation23 + $0x14] ss:$8 sps:$4 sm:$0xff]  }
 0x653   :  { %1616 = vmatpush1.bf16.msra.mxu0 %v2946_v23  ;;  %v3015_v23 = vld [vmem:[#allocation23 + $0x10] ss:$8 sps:$4 sm:$0xff]  }
 0x654   :  { %1617 = vmatprep.subr.bf16.mxu0 %v2951_v24  ;;  %v3020_v24 = vld [vmem:[#allocation23 + $0x24] ss:$8 sps:$4 sm:$0xff]  }
 0x657   :  { %1618 = vmatpush1.bf16.msra.mxu0 %v2949_v0  ;;  %v3018_v0 = vld [vmem:[#allocation23 + $0x20] ss:$8 sps:$4 sm:$0xff]  }
 0x658   :  { %1619 = vmatprep.subr.bf16.mxu0 %v2954_v25  ;;  %v3023_v25 = vld [vmem:[#allocation23 + $0x34] ss:$8 sps:$4 sm:$0xff]  }
 0x65b   :  { %1620 = vmatpush1.bf16.msra.mxu0 %v2952_v4  ;;  %v3021_v4 = vld [vmem:[#allocation23 + $0x30] ss:$8 sps:$4 sm:$0xff]  }
 0x65c   :  { %1621 = vmatprep.subr.bf16.mxu0 %v2957_v26  ;;  %v3026_v26 = vld [vmem:[#allocation23 + $0x44] ss:$8 sps:$4 sm:$0xff]  }
 0x65f   :  { %1622 = vmatpush1.bf16.msra.mxu0 %v2955_v27  ;;  %v3024_v27 = vld [vmem:[#allocation23 + $0x40] ss:$8 sps:$4 sm:$0xff]  }
 0x660   :  { %1623 = vmatprep.subr.bf16.mxu0 %v2960_v28  ;;  %v3029_v28 = vld [vmem:[#allocation23 + $0x54] ss:$8 sps:$4 sm:$0xff]  }
 0x663   :  { %1624 = vmatpush1.bf16.msra.mxu0 %v2958_v29  ;;  %v3027_v29 = vld [vmem:[#allocation23 + $0x50] ss:$8 sps:$4 sm:$0xff]  }
 0x664   :  { %1625 = vmatprep.subr.bf16.mxu0 %v2963_v38  ;;  %v3044_v38 = vld [vmem:[#allocation23 + $0xa4] ss:$8 sps:$4 sm:$0xff]  }
 0x667   :  { %1626 = vmatpush1.bf16.msra.mxu0 %v2961_v39  ;;  %v3042_v39 = vld [vmem:[#allocation23 + $0xa0] ss:$8 sps:$4 sm:$0xff]  }
 0x668   :  { %2111 = vmatprep.subr.bf16.mxu0 %v3014_v21 }
 0x71d   :  { %v1387_v31 = vpop.f32.mrb[12].mxu0 }
 0x71e   :  { %v1388_v32 = vadd.f32 %v1387_v31, %v1304_v30  ;;  %v2724_v33 = vpop.f32.mrb[13].mxu0  ;;  %v3032_v30 = vld [vmem:[#allocation23 + $0x64] ss:$8 sps:$4 sm:$0xff]   ;;  %v3030_v31 = vld [vmem:[#allocation23 + $0x60] ss:$8 sps:$4 sm:$0xff]  }
 0x71f   :  { %v1390_v34 = vpop.f32.mrb[14].mxu0  ;;  %v3033_v33 = vld [vmem:[#allocation23 + $0x70] ss:$8 sps:$4 sm:$0xff]  }
 0x720   :  { %v1393_v35 = vmax.f32 %v1388_v32, 0.0  ;;  %v2725_v36 = vpop.f32.mrb[15].mxu0  ;;  %v3035_v32 = vld [vmem:[#allocation23 + $0x74] ss:$8 sps:$4 sm:$0xff]   ;;  %v3038_v34 = vld [vmem:[#allocation23 + $0x84] ss:$8 sps:$4 sm:$0xff]  }
 0x721   :  { %v3041_v36 = vld [vmem:[#allocation23 + $0x94] ss:$8 sps:$4 sm:$0xff]  }
 0x722   :  { %v1394_v37 = vpack.c.bf16 %v1393_v35, %v1393_v35  ;;  %v3036_v35 = vld [vmem:[#allocation23 + $0x80] ss:$8 sps:$4 sm:$0xff]  }
 0x724   :  { %2743 = vmatmul.mubr.bf16.vlgmr.msra.gmra.mrb[12].mxu1 %v1394_v37  ;;  %v3039_v37 = vld [vmem:[#allocation23 + $0x90] ss:$8 sps:$4 sm:$0xff]  }
 0x725   :  { %1862 = vmatpush1.bf16.msra.mxu1 %v2964_v40  ;;  %v3047_v40 = vld [vmem:[#allocation23 + $0xb4] ss:$8 sps:$4 sm:$0xff]  }
 0x726   :  { %1863 = vmatprep.subr.bf16.mxu1 %v2969_v42  ;;  %v3050_v42 = vld [vmem:[#allocation23 + $0xc4] ss:$8 sps:$4 sm:$0xff]  }
 0x729   :  { %1864 = vmatpush1.bf16.msra.mxu1 %v2967_v43  ;;  %v3048_v43 = vld [vmem:[#allocation23 + $0xc0] ss:$8 sps:$4 sm:$0xff]  }
 0x72a   :  { %1865 = vmatprep.subr.bf16.mxu1 %v2972_v44  ;;  %v3053_v44 = vld [vmem:[#allocation23 + $0xd4] ss:$8 sps:$4 sm:$0xff]  }
 0x72d   :  { %1866 = vmatpush1.bf16.msra.mxu1 %v2970_v45  ;;  %v3051_v45 = vld [vmem:[#allocation23 + $0xd0] ss:$8 sps:$4 sm:$0xff]  }
 0x72e   :  { %1867 = vmatprep.subr.bf16.mxu1 %v2975_v46  ;;  %v1519_v46 = vld [vmem:[#allocation6 + $0x10] ss:$8 sm:$0x3] }
 0x731   :  { %1868 = vmatpush1.bf16.msra.mxu1 %v2973_v47  ;;  %v1524_v47 = vrot.slane %v1519_v46, %v3760_v18 }
 0x732   :  { %1869 = vmatprep.subr.bf16.mxu1 %v2978_v48  ;;  %v1528_v48 = vrot.slane %v1519_v46, %v3762_v20 }
 0x735   :  { %1870 = vmatpush1.bf16.msra.mxu1 %v2976_v49 }
 0x736   :  { %1871 = vmatprep.subr.bf16.mxu1 %v2981_v50 }
 0x739   :  { %1872 = vmatpush1.bf16.msra.mxu1 %v2979_v51 }
 0x73a   :  { %1873 = vmatprep.subr.bf16.mxu1 %v2984_v52 }
 0x73d   :  { %1874 = vmatpush1.bf16.msra.mxu1 %v2982_v53 }
 0x73e   :  { %1875 = vmatprep.subr.bf16.mxu1 %v2987_v54 }
 0x741   :  { %1876 = vmatpush1.bf16.msra.mxu1 %v2985_v55 }
 0x742   :  { %1877 = vmatprep.subr.bf16.mxu1 %v2990_v56 }
 0x745   :  { %1878 = vmatpush1.bf16.msra.mxu1 %v2988_v57 }
 0x746   :  { %1879 = vmatprep.subr.bf16.mxu1 %v2993_v58 }
 0x749   :  { %1880 = vmatpush1.bf16.msra.mxu1 %v2991_v59  ;;  %v3056_v59 = vld [vmem:[#allocation23 + $0xe4] ss:$8 sps:$4 sm:$0xff]  }
 0x74a   :  { %1881 = vmatprep.subr.bf16.mxu1 %v2996_v60  ;;  %v3054_v60 = vld [vmem:[#allocation23 + $0xe0] ss:$8 sps:$4 sm:$0xff]  }
 0x74d   :  { %1882 = vmatpush1.bf16.msra.mxu1 %v2994_v61  ;;  %v3059_v61 = vld [vmem:[#allocation23 + $0xf4] ss:$8 sps:$4 sm:$0xff]  }
 0x74e   :  { %1883 = vmatprep.subr.bf16.mxu1 %v2999_v62  ;;  %v3057_v62 = vld [vmem:[#allocation23 + $0xf0] ss:$8 sps:$4 sm:$0xff]  }
 0x751   :  { %1884 = vmatpush1.bf16.msra.mxu1 %v2997_v63  ;;  %v3060_v63 = vld [vmem:[#allocation24 + $0x40] sm:$0xff]  }
 0x752   :  { %1885 = vmatprep.subr.bf16.mxu1 %v3002_v1  ;;  %v3061_v1 = vld [vmem:[#allocation24] sm:$0xff]  }
 0x755   :  { %1886 = vmatpush1.bf16.msra.mxu1 %v3000_v2  ;;  %v3062_v2 = vld [vmem:[#allocation24 + $0x48] sm:$0xff]  }
 0x756   :  { %1887 = vmatprep.subr.bf16.mxu1 %v3005_v3  ;;  %v3063_v3 = vld [vmem:[#allocation24 + $0x8] sm:$0xff]  }
 0x759   :  { %1888 = vmatpush1.bf16.msra.mxu1 %v3003_v5  ;;  %v3064_v5 = vld [vmem:[#allocation24 + $0x50] sm:$0xff]  }
 0x75a   :  { %1889 = vmatprep.subr.bf16.mxu1 %v3008_v14 }
 0x75d   :  { %1890 = vmatpush1.bf16.msra.mxu1 %v3006_v15 }
 0x75e   :  { %1891 = vmatprep.subr.bf16.mxu1 %v3011_v16 }
 0x761   :  { %1892 = vmatpush1.bf16.msra.mxu1 %v3009_v17 }
 0x762   :  { %2644 = vmatprep.subr.bf16.mxu1 %v3060_v63 }
 0x7f7   :  { %v1494_v7 = vpop.f32.mrb[12].mxu1 }
 0x7f8   :  { %v1495_v8 = vadd.f32 %v1494_v7, %v1411_v6  ;;  %v2744_v9 = vpop.f32.mrb[13].mxu1  ;;  %v3065_v6 = vld [vmem:[#allocation24 + $0x10] sm:$0xff]   ;;  %v3066_v7 = vld [vmem:[#allocation24 + $0x58] sm:$0xff]  }
 0x7f9   :  { %v1497_v10 = vpop.f32.mrb[14].mxu1  ;;  %v3068_v9 = vld [vmem:[#allocation24 + $0x60] sm:$0xff]  }
 0x7fa   :  { %v1500_v11 = vmax.f32 %v1495_v8, 0.0  ;;  %v2745_v12 = vpop.f32.mrb[15].mxu1  ;;  %v3067_v8 = vld [vmem:[#allocation24 + $0x18] sm:$0xff]   ;;  %v3069_v10 = vld [vmem:[#allocation24 + $0x20] sm:$0xff]  }
 0x7fb   :  { %v3071_v12 = vld [vmem:[#allocation24 + $0x28] sm:$0xff]  }
 0x7fc   :  { %v1501_v13 = vpack.c.bf16 %v1500_v11, %v1500_v11  ;;  %v3070_v11 = vld [vmem:[#allocation24 + $0x68] sm:$0xff]  }
 0x7fe   :  { %1644 = vmatmul.mubr.bf16.vlgmr.msra.gmra.mrb[16].mxu0 %v1501_v13  ;;  %v1689_v13 = vld [vmem:[#allocation6 + $0x11] ss:$8 sm:$0x3] }
 0x7ff   :  { %2112 = vmatpush1.bf16.msra.mxu0 %v3012_v19  ;;  %v1694_v14 = vrot.slane %v1689_v13, %v3760_v18  ;;  %v1698_v15 = vrot.slane %v1689_v13, %v3762_v20 }
 0x800   :  { %2113 = vmatprep.subr.bf16.mxu0 %v3017_v22 }
 0x803   :  { %2114 = vmatpush1.bf16.msra.mxu0 %v3015_v23 }
 0x804   :  { %2115 = vmatprep.subr.bf16.mxu0 %v3020_v24 }
 0x807   :  { %2116 = vmatpush1.bf16.msra.mxu0 %v3018_v0 }
 0x808   :  { %2117 = vmatprep.subr.bf16.mxu0 %v3023_v25 }
 0x80b   :  { %2118 = vmatpush1.bf16.msra.mxu0 %v3021_v4 }
 0x80c   :  { %2119 = vmatprep.subr.bf16.mxu0 %v3026_v26  ;;  %v3072_v26 = vld [vmem:[#allocation24 + $0x70] sm:$0xff]  }
 0x80f   :  { %2120 = vmatpush1.bf16.msra.mxu0 %v3024_v27  ;;  %v3073_v27 = vld [vmem:[#allocation24 + $0x30] sm:$0xff]  }
 0x810   :  { %2121 = vmatprep.subr.bf16.mxu0 %v3029_v28  ;;  %v3074_v28 = vld [vmem:[#allocation24 + $0x78] sm:$0xff]  }
 0x813   :  { %2122 = vmatpush1.bf16.msra.mxu0 %v3027_v29  ;;  %v3075_v29 = vld [vmem:[#allocation24 + $0x38] sm:$0xff]  }
 0x814   :  { %2123 = vmatprep.subr.bf16.mxu0 %v3032_v30  ;;  %v1939_v30 = vld [vmem:[#allocation6 + $0x12] ss:$8 sm:$0x3] }
 0x817   :  { %2124 = vmatpush1.bf16.msra.mxu0 %v3030_v31  ;;  %v1944_v31 = vrot.slane %v1939_v30, %v3760_v18 }
 0x818   :  { %2125 = vmatprep.subr.bf16.mxu0 %v3035_v32  ;;  %v1948_v32 = vrot.slane %v1939_v30, %v3762_v20 }
 0x81b   :  { %2126 = vmatpush1.bf16.msra.mxu0 %v3033_v33 }
 0x81c   :  { %2127 = vmatprep.subr.bf16.mxu0 %v3038_v34 }
 0x81f   :  { %2128 = vmatpush1.bf16.msra.mxu0 %v3036_v35 }
 0x820   :  { %2129 = vmatprep.subr.bf16.mxu0 %v3041_v36 }
 0x823   :  { %2130 = vmatpush1.bf16.msra.mxu0 %v3039_v37 }
 0x824   :  { %2131 = vmatprep.subr.bf16.mxu0 %v3044_v38 }
 0x827   :  { %2132 = vmatpush1.bf16.msra.mxu0 %v3042_v39 }
 0x828   :  { %2133 = vmatprep.subr.bf16.mxu0 %v3047_v40 }
 0x82b   :  { %2134 = vmatpush1.bf16.msra.mxu0 %v3045_v41 }
 0x82c   :  { %2135 = vmatprep.subr.bf16.mxu0 %v3050_v42 }
 0x82f   :  { %2136 = vmatpush1.bf16.msra.mxu0 %v3048_v43 }
 0x830   :  { %2137 = vmatprep.subr.bf16.mxu0 %v3053_v44 }
 0x833   :  { %2138 = vmatpush1.bf16.msra.mxu0 %v3051_v45 }
 0x834   :  { %2139 = vmatprep.subr.bf16.mxu0 %v3056_v59 }
 0x837   :  { %2140 = vmatpush1.bf16.msra.mxu0 %v3054_v60 }
 0x838   :  { %2141 = vmatprep.subr.bf16.mxu0 %v3059_v61 }
 0x83b   :  { %2142 = vmatpush1.bf16.msra.mxu0 %v3057_v62 }
 0x8d1   :  { %v1645_v49 = vpop.f32.mrb[16].mxu0 }
 0x8d2   :  { %v1646_v50 = vadd.f32 %v1645_v49, %v1524_v47  ;;  %v1647_v51 = vpop.f32.mrb[17].mxu0 }
 0x8d3   :  { %v1648_v52 = vadd.f32 %v1647_v51, %v1528_v48  ;;  %v1649_v53 = vpop.f32.mrb[18].mxu0 }
 0x8d4   :  { %v1652_v54 = vmax.f32 %v1646_v50, 0.0  ;;  %v1650_v55 = vpop.f32.mrb[19].mxu0 }
 0x8d5   :  { %v1653_v56 = vmax.f32 %v1648_v52, 0.0 }
 0x8d6   :  { %v1654_v58 = vpack.c.bf16 %v1652_v54, %v1652_v54 }
 0x8d7   :  { %v1655_v57 = vpack.c.bf16 %v1653_v56, %v1653_v56 }
 0x8d9   :  { %1893 = vmatprep.mubr.bf16.mxu1 %v1655_v57 }
 0x8da   :  { %1894 = vmatmul.mubr.bf16.vlgmr.msra.gmra.mrb[16].mxu1 %v1654_v58 }
 0x8db   :  { %2645 = vmatpush3.bf16.msra.mxu1 %v3061_v1 }
 0x8dc   :  { %2646 = vmatprep.subr.bf16.mxu1 %v3062_v2 }
 0x8df   :  { %2647 = vmatpush3.bf16.msra.mxu1 %v3063_v3 }
 0x8e0   :  { %2648 = vmatprep.subr.bf16.mxu1 %v3064_v5 }
 0x8e3   :  { %2649 = vmatpush3.bf16.msra.mxu1 %v3065_v6 }
 0x8e4   :  { %2650 = vmatprep.subr.bf16.mxu1 %v3066_v7 }
 0x8e7   :  { %2651 = vmatpush3.bf16.msra.mxu1 %v3067_v8 }
 0x8e8   :  { %2652 = vmatprep.subr.bf16.mxu1 %v3068_v9 }
 0x8eb   :  { %2653 = vmatpush3.bf16.msra.mxu1 %v3069_v10 }
 0x8ec   :  { %2654 = vmatprep.subr.bf16.mxu1 %v3070_v11 }
 0x8ef   :  { %2655 = vmatpush3.bf16.msra.mxu1 %v3071_v12 }
 0x8f0   :  { %2656 = vmatprep.subr.bf16.mxu1 %v3072_v26 }
 0x8f3   :  { %2657 = vmatpush3.bf16.msra.mxu1 %v3073_v27 }
 0x8f4   :  { %2658 = vmatprep.subr.bf16.mxu1 %v3074_v28 }
 0x8f7   :  { %2659 = vmatpush3.bf16.msra.mxu1 %v3075_v29 }
 0x9ad   :  { %v1895_v16 = vpop.f32.mrb[16].mxu1 }
 0x9ae   :  { %v1896_v17 = vadd.f32 %v1895_v16, %v1694_v14  ;;  %v1897_v19 = vpop.f32.mrb[17].mxu1 }
 0x9af   :  { %v1898_v21 = vadd.f32 %v1897_v19, %v1698_v15  ;;  %v1899_v22 = vpop.f32.mrb[18].mxu1 }
 0x9b0   :  { %v1902_v23 = vmax.f32 %v1896_v17, 0.0  ;;  %v1900_v24 = vpop.f32.mrb[19].mxu1 }
 0x9b1   :  { %v1903_v0 = vmax.f32 %v1898_v21, 0.0 }
 0x9b2   :  { %v1904_v4 = vpack.c.bf16 %v1902_v23, %v1902_v23 }
 0x9b3   :  { %v1905_v25 = vpack.c.bf16 %v1903_v0, %v1903_v0 }
 0x9b5   :  { %2143 = vmatprep.mubr.bf16.mxu0 %v1905_v25 }
 0x9b6   :  { %2144 = vmatmul.mubr.bf16.vlgmr.msra.gmra.mrb[20].mxu0 %v1904_v4 }
 0xa89   :  { %v2145_v33 = vpop.f32.mrb[20].mxu0 }
 0xa8a   :  { %v2146_v34 = vadd.f32 %v2145_v33, %v1944_v31  ;;  %v2147_v35 = vpop.f32.mrb[21].mxu0 }
 0xa8b   :  { %v2148_v36 = vadd.f32 %v2147_v35, %v1948_v32  ;;  %v2149_v37 = vpop.f32.mrb[22].mxu0 }
 0xa8c   :  { %v2152_v38 = vmax.f32 %v2146_v34, 0.0  ;;  %v2150_v39 = vpop.f32.mrb[23].mxu0 }
 0xa8d   :  { %v2153_v40 = vmax.f32 %v2148_v36, 0.0 }
 0xa8e   :  { %v2154_v42 = vpack.c.bf16 %v2152_v38, %v2152_v38 }
 0xa8f   :  { %v2155_v41 = vpack.c.bf16 %v2153_v40, %v2153_v40 }
 0xa91   :  { %2317 = vmatprep.mubr.bf16.mxu1 %v2155_v41 }
 0xa92   :  { %2318 = vmatmul.mubr.bf16.vlgmr.msra.gmra.mrb[20].mxu1 %v2154_v42 }
 0xa93   :  { %3396 = shalt.err (!%p3393_p4)
}
 0xa94   :  { %s3397_s7 = scalar_lea.hbm %s3856_s15, 32 }
 0xa95   :  { %p3398_p5 = scmp.ne.s32.totalorder %s3856_s15, %s3397_s7  ;;  %p3401_p6 = scmp.lt.u32.totalorder %s3397_s7, %s3856_s15 }
 0xa97   :  { %p3403_p7 = pnand %p3401_p6, %p3398_p5 }
 0xa99   :  { %3406 = shalt.err (!%p3403_p7)
}
 0xa9a   :  { %2345 = dma.vmem_to_hbm [thread:$0]  %s2343_s3, 32, %s3856_s15, [#allocation28]   ;;  %v2188_v20 = vld [vmem:[#allocation6 + $0x13] ss:$0 sm:$0xff] }
 0xa9b   :  { %s3474_s16 = smov [#allocation26]  }
 0xa9c   :  { %s2332_s14 = sshll.u32 %s3474_s16, 4  ;;  %s2333_s14 = int_to_ptr.vmem [resolvable:$true] %s2332_s14 }
 0xa9d   :  { %s3407_s6 = scalar_lea.vmem %s2333_s14, 32  ;;  %p3412_p9 = scmp.lt.s32.totalorder %s2333_s14, %s2333_s14 }
 0xa9e   :  { %p3408_p8 = scmp.ne.s32.totalorder %s2333_s14, %s3407_s6  ;;  %p3413_p10 = scmp.lt.s32.totalorder %s3407_s6, %s3407_s6 }
 0xaa0   :  { %p3414_p11 = por %p3413_p10, %p3412_p9 }
 0xaa2   :  { %p3415_p12 = pnand %p3414_p11, %p3408_p8 }
 0xb65   :  { %v2660_v18 = vpop.f32.mrb[20].mxu1 }
 0xb66   :  { %v2661_v43 = vpop.f32.mrb[21].mxu1 }
 0xb67   :  { %v2662_v44 = vadd.f32 %v2661_v43, %v2660_v18  ;;  %v2663_v45 = vpop.f32.mrb[22].mxu1 }
 0xb68   :  { %v2664_v46 = vpop.f32.mrb[23].mxu1 }
 0xb69   :  { %v2320_v47 = vadd.f32 %v2662_v44, %v2188_v20 }
 0xb6b   :  { %2325 = vst [vmem:[#allocation26] sm:$0x3] %v2320_v47 }
 0xb6c   :  { %3418 = shalt.err (!%p3415_p12)
}
 0xb6d   :  { %s3859_s22 = sld [smem:[#allocation39_spill]] }
 0xb73   :  { %s3419_s23 = scalar_lea.hbm %s3859_s22, 32 }
 0xb74   :  { %p3420_p13 = scmp.ne.s32.totalorder %s3859_s22, %s3419_s23  ;;  %p3423_p0 = scmp.lt.u32.totalorder %s3419_s23, %s3859_s22 }
 0xb76   :  { %p3425_p1 = pnand %p3423_p0, %p3420_p13 }
 0xb78   :  { %3428 = shalt.err (!%p3425_p1)
}
 0xb79   :  { %2335 = dma.vmem_to_hbm [thread:$0]  %s2333_s14, 32, %s3859_s22, [#allocation5]  }
 0xb7a   :  { %3445 = dma.done.wait [#allocation5], 32  }
 0xb7b   :  { %3446 = vsyncadd [#allocation5], 4294967264 }
 0xb7c   :  { %3447 = dma.done.wait [#allocation28], 32  }
 0xb7d   :  { %3448 = vsyncadd [#allocation28], 4294967264 }
 0xb7e   :  { %2352 = vsyncpa [#allocation4], 1 }
 0xb7f   :  { %2353 = vsyncpa [#allocation7], 1 }
 0xb80   :  { %2354 = vsyncpa [#allocation10], 1 }
 0xb81   :  { %2355 = vsyncpa [#allocation13], 1 }
 0xb82   :  { %2356 = vsyncpa [#allocation16], 1 }
 0xb83   :  { %2357 = vsyncpa [#allocation19], 1 }
 0xb84   :  { %2358 = vsyncpa [#allocation22], 1 }
 0xb85   :  { %2359 = vsyncpa [#allocation25], 1 }
 0xb86   :  { %2360 = vsyncpa [#allocation5], 1 }
 0xb87   :  { %2361 = vsyncpa [#allocation28], 1 }

</bundles_post_ra>
